<compile_context>
chip_gen: v7x
topology: tpu7x:2x2x1
jax: 0.10.0
libtpu: 0.0.40
codegen_flags: <defaults>
</compile_context>

<pallas_src>
import functools

import numpy as np
import jax
import jax.numpy as jnp
from jax.experimental import pallas as pl
from jax.experimental.pallas import tpu as pltpu

BN_EPS = 1e-5
LANE = 128


# ----------------------------------------------------------------------------
# Pallas kernel
# ----------------------------------------------------------------------------
def dual_pmf_kernel(x_ref, w_ref, b_ref, out_ref, *,
                    n_pmf_layers, n_term_layers, pmf_out_each, pad, x_width):
    x = x_ref[...].astype(jnp.float32)                      # (tile_b, x_width)

    def dense(h, layer_idx, din):
        # Weight rows >= real din and cols outside the layer's real output
        # lanes are zero-padded, so pad lanes never contaminate real outputs.
        # bf16 MXU operands, f32 accumulation; bias stays f32.
        w = w_ref[layer_idx, :din, :]                       # bf16 (din, pad)
        b = b_ref[layer_idx]                                # f32  (1, pad)
        return jnp.dot(h.astype(jnp.bfloat16), w,
                       preferred_element_type=jnp.float32) + b

    def recip(v):
        # EUP approx seed + two Newton steps -> f32-accurate 1/v without the
        # VPU divide sequence (operand is only (tile_b, 1): near free).
        r = pl.reciprocal(v, approx=True)
        r = r * (2.0 - v * r)
        r = r * (2.0 - v * r)
        return r

    # ---- fused dual-PMF estimator (block-diagonal weights, BN folded) ----
    h = dense(x, 0, x_width)
    for li in range(1, n_pmf_layers):
        h = dense(jnp.maximum(h, 0.0), li, pad)
    s = jax.nn.sigmoid(h)                                   # (tile_b, pad)

    col = jax.lax.broadcasted_iota(jnp.int32, (1, pad), 1)
    in1 = col < pmf_out_each
    in2 = (col >= pmf_out_each) & (col < 2 * pmf_out_each)
    s1 = jnp.sum(jnp.where(in1, s, 0.0), axis=1, keepdims=True)
    s2 = jnp.sum(jnp.where(in2, s, 0.0), axis=1, keepdims=True)
    scale = jnp.where(in1, recip(s1), 0.0) + jnp.where(in2, recip(s2), 0.0)
    pmf = s * scale                                         # pad lanes -> 0

    # ---- terminal PerceptronBD (no final activation) ----
    h = dense(pmf, n_pmf_layers, pad)
    for k in range(1, n_term_layers):
        h = dense(jnp.maximum(h, 0.0), n_pmf_layers + k, pad)

    # The last terminal layer's weights/bias were packed at lane offset
    # 2*pmf_out_each, so `h` already lives in lanes disjoint from the pmf
    # lanes -> a single full-width (unmasked) lane-dense store carries both.
    out_ref[...] = (pmf + h).astype(out_ref.dtype)


# ----------------------------------------------------------------------------
# One-time parameter preparation (BN fold, branch fusion, packing)
# ----------------------------------------------------------------------------
def _round_up(x, m):
    return (x + m - 1) // m * m


def fold_bn_into_linear(w, b, gamma, beta, mean, var):
    """Eval-mode BN(x @ W + b) == x @ W' + b' (exact affine fold)."""
    w, b, gamma, beta, mean, var = (np.asarray(a, np.float32)
                                    for a in (w, b, gamma, beta, mean, var))
    s = gamma / np.sqrt(var + BN_EPS)
    return w * s, (b - mean) * s + beta


def fold_mlp(raw_params, nodes):
    """raw layout: [W0, b0] + [gamma, beta, mean, var, W, b] per hidden layer.
    Returns list of (W, b) with every BatchNorm folded into the Linear that
    precedes it (the last Linear has no BN after it)."""
    n_hidden = len(nodes) - 2
    layers = []
    w, b = raw_params[0], raw_params[1]
    idx = 2
    for _ in range(n_hidden):
        g, be, m, v, w_next, b_next = raw_params[idx:idx + 6]
        idx += 6
        layers.append(fold_bn_into_linear(w, b, g, be, m, v))
        w, b = w_next, b_next
    layers.append((np.asarray(w, np.float32), np.asarray(b, np.float32)))
    return layers


def blockdiag_fuse(layers1, layers2):
    """Fuse two identically-structured MLPs into one via block-diag weights."""
    fused = []
    for (w1, b1), (w2, b2) in zip(layers1, layers2):
        w1, b1, w2, b2 = (np.asarray(a, np.float32) for a in (w1, b1, w2, b2))
        d1i, d1o = w1.shape
        d2i, d2o = w2.shape
        w = np.zeros((d1i + d2i, d1o + d2o), np.float32)
        w[:d1i, :d1o] = w1
        w[d1i:, d1o:] = w2
        fused.append((w, np.concatenate([b1, b2])))
    return fused


def pack_params(layers, pad, last_col_offset):
    """Pack (W, b) pairs into w[n_layers, pad, pad] (bf16) and
    b[n_layers, 1, pad] (f32). All layers are packed at column offset 0 except
    the LAST one, whose columns go to `last_col_offset` so the terminal output
    lands in spare lanes of the merged output buffer."""
    n = len(layers)
    w_arr = np.zeros((n, pad, pad), np.float32)
    b_arr = np.zeros((n, 1, pad), np.float32)
    for i, (w, b) in enumerate(layers):
        w = np.asarray(w, np.float32)
        b = np.asarray(b, np.float32)
        din, dout = w.shape
        off = last_col_offset if i == n - 1 else 0
        w_arr[i, :din, off:off + dout] = w
        b_arr[i, 0, off:off + dout] = b
    return jnp.asarray(w_arr, jnp.bfloat16), jnp.asarray(b_arr, jnp.float32)


def prepare_params(pmf1_params, pmf2_params, term_params, pmf_nodes, term_nodes):
    pmf_layers = blockdiag_fuse(fold_mlp(pmf1_params, pmf_nodes),
                                fold_mlp(pmf2_params, pmf_nodes))
    term_layers = fold_mlp(term_params, term_nodes)
    all_layers = pmf_layers + term_layers
    pmf_out2 = 2 * pmf_nodes[-1]
    merged_out = pmf_out2 + term_nodes[-1]       # pmf lanes + terminal lanes
    max_dim = max(max(max(w.shape) for w, _ in all_layers),
                  2 * pmf_nodes[0], merged_out)
    pad = max(LANE, _round_up(max_dim, LANE))
    w_packed, b_packed = pack_params(all_layers, pad, last_col_offset=pmf_out2)
    return w_packed, b_packed, pad, len(pmf_layers), len(term_layers)


# ----------------------------------------------------------------------------
# Tiling: large tiles (amortize ~0.35us/step, fill MXU sublanes), capped at
# 1024 rows (fits v7x's smaller VMEM comfortably: ~2 MB working set), and a
# grid length >= 2 whenever possible so v7x's two TensorCores both get work.
# ----------------------------------------------------------------------------
def _choose_tiling(batch, tile_cap=1024, min_grid=2, sublane=8):
    n_tiles = max(min_grid, -(-batch // tile_cap))
    tile_b = _round_up(max(-(-batch // n_tiles), sublane), sublane)
    padded_batch = _round_up(batch, tile_b)
    return tile_b, padded_batch


# ----------------------------------------------------------------------------
# Wrapper
# ----------------------------------------------------------------------------
def dual_pmf_tmp_net(x, w_packed, b_packed, pad, n_pmf_layers, n_term_layers,
                     pmf_out_each, term_out):
    batch, x_width = x.shape
    tile_b, padded_batch = _choose_tiling(batch)
    if padded_batch != batch:
        # Zero padding rows: sigmoid(bias) > 0 so the reciprocal stays finite;
        # the padded rows are sliced off below.
        x = jnp.pad(x, ((0, padded_batch - batch), (0, 0)))
    grid = (padded_batch // tile_b,)

    kernel = functools.partial(
        dual_pmf_kernel,
        n_pmf_layers=n_pmf_layers, n_term_layers=n_term_layers,
        pmf_out_each=pmf_out_each, pad=pad, x_width=x_width)

    def call(single_buffer_weights):
        if single_buffer_weights and hasattr(pl, "Buffered"):
            # Constant index_map -> weight content never changes; a single
            # buffer saves one weight-sized VMEM buffer + a DMA descriptor.
            w_spec = pl.BlockSpec(w_packed.shape, lambda i: (0, 0, 0),
                                  pipeline_mode=pl.Buffered(1))
        else:
            w_spec = pl.BlockSpec(w_packed.shape, lambda i: (0, 0, 0))
        return pl.pallas_call(
            kernel,
            out_shape=jax.ShapeDtypeStruct((padded_batch, pad), jnp.float32),
            grid=grid,
            in_specs=[
                # x stays at its real lane width (contiguous in HBM; padding
                # to 128 lanes would 4x the input read traffic).
                pl.BlockSpec((tile_b, x_width), lambda i: (i, 0)),
                w_spec,
                pl.BlockSpec(b_packed.shape, lambda i: (0, 0, 0)),
            ],
            out_specs=pl.BlockSpec((tile_b, pad), lambda i: (i, 0)),
            compiler_params=pltpu.CompilerParams(
                dimension_semantics=("parallel",)),
        )(x, w_packed, b_packed)

    try:
        merged = call(True)
    except Exception:
        # JAX version without single-buffer support -> default double-buffered.
        merged = call(False)

    pmf = merged[:batch, :2 * pmf_out_each]
    tmp = merged[:batch, 2 * pmf_out_each:2 * pmf_out_each + term_out]
    return pmf, tmp


# ----------------------------------------------------------------------------
# Deterministic parameter init (He-normal Linear weights, zero biases).
# BN running stats are randomized so the BN-fold path is genuinely exercised.
# ----------------------------------------------------------------------------
def init_linear(key, fan_in, fan_out):
    std = (2.0 / fan_in) ** 0.5
    w = jax.random.normal(key, (fan_in, fan_out), jnp.float32) * std
    b = jnp.zeros((fan_out,), jnp.float32)
    return w, b


def init_mlp_params(key, nodes):
    """Param layout matches fold_mlp() / the reference."""
    params = []
    keys = jax.random.split(key, 2 * len(nodes))
    w, b = init_linear(keys[0], nodes[0], nodes[1])
    params += [w, b]
    for i, count in enumerate(nodes[1:-1], start=1):
        kk = jax.random.split(keys[i], 4)
        gamma = 1.0 + 0.1 * jax.random.normal(kk[0], (count,), jnp.float32)
        beta = 0.1 * jax.random.normal(kk[1], (count,), jnp.float32)
        mean = 0.1 * jax.random.normal(kk[2], (count,), jnp.float32)
        var = jax.random.uniform(kk[3], (count,), jnp.float32, 0.5, 1.5)
        w, b = init_linear(keys[len(nodes) + i], count, nodes[i + 1])
        params += [gamma, beta, mean, var, w, b]
    return params


# ----------------------------------------------------------------------------
# Pure-JAX f32 reference (unfused, explicit BN) for the correctness check
# ----------------------------------------------------------------------------
def _ref_mlp(h, params, n_hidden, final_pmf):
    idx = 0

    def take(n):
        nonlocal idx
        vals = params[idx:idx + n]
        idx += n
        return vals

    w, b = take(2)
    h = h @ w + b
    for _ in range(n_hidden):
        g, be, m, v, w, b = take(6)
        h = g * (h - m) / jnp.sqrt(v + BN_EPS) + be
        h = jnp.maximum(h, 0.0)
        h = h @ w + b
    if final_pmf:
        h = jax.nn.sigmoid(h)
        h = h / jnp.sum(h, axis=1, keepdims=True)
    return h


def ref_forward(x, pmf1_params, pmf2_params, term_params, pmf_nodes, term_nodes):
    half = x.shape[1] // 2
    n_pmf_hidden = len(pmf_nodes) - 2
    n_term_hidden = len(term_nodes) - 2
    p1 = _ref_mlp(x[:, :half], pmf1_params, n_pmf_hidden, True)
    p2 = _ref_mlp(x[:, half:], pmf2_params, n_pmf_hidden, True)
    pmf = jnp.concatenate([p1, p2], axis=1)
    out = _ref_mlp(pmf, term_params, n_term_hidden, False)
    return pmf, out


# ----------------------------------------------------------------------------
if __name__ == "__main__":
    pmf_nodes = [16, 32, 20]                 # PMFEstimatorNet node counts
    terminal_fc_nodes = [32, 16, 4]          # terminal MLP node counts (user arg)
    term_nodes = [pmf_nodes[-1] * 2] + terminal_fc_nodes  # [40, 32, 16, 4]

    batch = 12   # deliberately NOT a tile multiple -> exercises batch padding
    key = jax.random.PRNGKey(0)
    kx, k1, k2, k3 = jax.random.split(key, 4)

    x = jax.random.normal(kx, (batch, 2 * pmf_nodes[0]), jnp.float32)  # (12, 32)
    pmf1_params = init_mlp_params(k1, pmf_nodes)
    pmf2_params = init_mlp_params(k2, pmf_nodes)
    term_params = init_mlp_params(k3, term_nodes)

    w_packed, b_packed, pad, n_pmf_layers, n_term_layers = prepare_params(
        pmf1_params, pmf2_params, term_params, pmf_nodes, term_nodes)

    pmf, tmp = dual_pmf_tmp_net(
        x, w_packed, b_packed, pad, n_pmf_layers, n_term_layers,
        pmf_nodes[-1], term_nodes[-1])
    jax.block_until_ready((pmf, tmp))

    pmf_ref, tmp_ref = ref_forward(
        x, pmf1_params, pmf2_params, term_params, pmf_nodes, term_nodes)

    assert pmf.shape == (batch, 2 * pmf_nodes[-1])
    assert tmp.shape == (batch, term_nodes[-1])
    # bf16 MXU operands (f32 accumulation) vs f32 reference -> bf16-level tol.
    assert jnp.allclose(pmf, pmf_ref, atol=3e-3, rtol=1e-2), \
        float(jnp.max(jnp.abs(pmf - pmf_ref)))
    assert jnp.allclose(tmp, tmp_ref, atol=5e-3, rtol=2e-2), \
        float(jnp.max(jnp.abs(tmp - tmp_ref)))
    # each PMF half sums to 1 (normalisation itself is f32-exact in-kernel)
    assert jnp.allclose(jnp.sum(pmf[:, :pmf_nodes[-1]], axis=1), 1.0, atol=1e-5)
    assert jnp.allclose(jnp.sum(pmf[:, pmf_nodes[-1]:], axis=1), 1.0, atol=1e-5)

    print("KERNEL_OK")
</pallas_src>

<mosaic_0001>
module attributes {stable_mosaic.version = 11 : i64} {
  func.func @dual_pmf_kernel(%arg0: i32, %arg1: memref<8x32xf32, #tpu.memory_space<vmem>>, %arg2: memref<5x128x128xbf16, #tpu.memory_space<vmem>>, %arg3: memref<5x1x128xf32, #tpu.memory_space<vmem>>, %arg4: memref<8x128xf32, #tpu.memory_space<vmem>>) attributes {dimension_semantics = [#tpu.dimension_semantics<parallel>], iteration_bounds = array<i64: 2>, scalar_prefetch = 0 : i64, scratch_operands = 0 : i64, tpu.core_type = #tpu.core_type<tc>, window_params = [{transform_indices = @transform_0, window_bounds = array<i64: 8, 32>}, {pipeline_mode = #tpu.pipeline_mode<synchronous>, transform_indices = @transform_1, window_bounds = array<i64: 5, 128, 128>}, {pipeline_mode = #tpu.pipeline_mode<synchronous>, transform_indices = @transform_2, window_bounds = array<i64: 5, 1, 128>}, {transform_indices = @transform_3, window_bounds = array<i64: 8, 128>}]} {
    %c0 = arith.constant 0 : index
    %c0_0 = arith.constant 0 : index
    %0 = vector.load %arg1[%c0, %c0_0] : memref<8x32xf32, #tpu.memory_space<vmem>>, vector<8x32xf32>
    %c0_1 = arith.constant 0 : index
    %c0_2 = arith.constant 0 : index
    %c0_3 = arith.constant 0 : index
    %1 = vector.load %arg2[%c0_1, %c0_2, %c0_3] : memref<5x128x128xbf16, #tpu.memory_space<vmem>>, vector<1x32x128xbf16>
    %2 = vector.shape_cast %1 : vector<1x32x128xbf16> to vector<32x128xbf16>
    %c0_4 = arith.constant 0 : index
    %c0_5 = arith.constant 0 : index
    %c0_6 = arith.constant 0 : index
    %3 = vector.load %arg3[%c0_4, %c0_5, %c0_6] : memref<5x1x128xf32, #tpu.memory_space<vmem>>, vector<1x1x128xf32>
    %4 = vector.shape_cast %3 : vector<1x1x128xf32> to vector<1x128xf32>
    %5 = arith.truncf %0 : vector<8x32xf32> to vector<8x32xbf16>
    %cst = arith.constant dense<0.000000e+00> : vector<8x128xf32>
    %6 = tpu.matmul %5, %2, %cst {dimension_numbers = #tpu.dot_dimension_numbers<[1], [0], [0], [1], [0, 0, 1, 1], [], []>} : vector<8x32xbf16>, vector<32x128xbf16>, vector<8x128xf32> -> vector<8x128xf32>
    %7 = vector.broadcast %4 : vector<1x128xf32> to vector<8x128xf32>
    %8 = arith.addf %6, %7 : vector<8x128xf32>
    %cst_7 = arith.constant 0.000000e+00 : f32
    %9 = vector.broadcast %cst_7 : f32 to vector<8x128xf32>
    %10 = arith.maximumf %8, %9 : vector<8x128xf32>
    %c1 = arith.constant 1 : index
    %c0_8 = arith.constant 0 : index
    %c0_9 = arith.constant 0 : index
    %11 = vector.load %arg2[%c1, %c0_8, %c0_9] : memref<5x128x128xbf16, #tpu.memory_space<vmem>>, vector<1x128x128xbf16>
    %12 = vector.shape_cast %11 : vector<1x128x128xbf16> to vector<128x128xbf16>
    %c1_10 = arith.constant 1 : index
    %c0_11 = arith.constant 0 : index
    %c0_12 = arith.constant 0 : index
    %13 = vector.load %arg3[%c1_10, %c0_11, %c0_12] : memref<5x1x128xf32, #tpu.memory_space<vmem>>, vector<1x1x128xf32>
    %14 = vector.shape_cast %13 : vector<1x1x128xf32> to vector<1x128xf32>
    %15 = arith.truncf %10 : vector<8x128xf32> to vector<8x128xbf16>
    %cst_13 = arith.constant dense<0.000000e+00> : vector<8x128xf32>
    %16 = tpu.matmul %15, %12, %cst_13 {dimension_numbers = #tpu.dot_dimension_numbers<[1], [0], [0], [1], [0, 0, 1, 1], [], []>} : vector<8x128xbf16>, vector<128x128xbf16>, vector<8x128xf32> -> vector<8x128xf32>
    %17 = vector.broadcast %14 : vector<1x128xf32> to vector<8x128xf32>
    %18 = arith.addf %16, %17 : vector<8x128xf32>
    %19 = arith.negf %18 : vector<8x128xf32>
    %20 = math.exp %19 : vector<8x128xf32>
    %cst_14 = arith.constant 1.000000e+00 : f32
    %21 = vector.broadcast %cst_14 : f32 to vector<8x128xf32>
    %22 = arith.addf %21, %20 : vector<8x128xf32>
    %23 = arith.divf %21, %22 : vector<8x128xf32>
    %24 = tpu.iota {dimensions = array<i32: 1>} : vector<1x128xi32>
    %c20_i32 = arith.constant 20 : i32
    %25 = vector.broadcast %c20_i32 : i32 to vector<1x128xi32>
    %26 = arith.cmpi slt, %24, %25 : vector<1x128xi32>
    %c20_i32_15 = arith.constant 20 : i32
    %27 = vector.broadcast %c20_i32_15 : i32 to vector<1x128xi32>
    %28 = arith.cmpi sge, %24, %27 : vector<1x128xi32>
    %c40_i32 = arith.constant 40 : i32
    %29 = vector.broadcast %c40_i32 : i32 to vector<1x128xi32>
    %30 = arith.cmpi slt, %24, %29 : vector<1x128xi32>
    %31 = arith.andi %28, %30 : vector<1x128xi1>
    %cst_16 = arith.constant 0.000000e+00 : f32
    %32 = vector.shape_cast %26 : vector<1x128xi1> to vector<1x128xi1>
    %33 = vector.broadcast %32 : vector<1x128xi1> to vector<8x128xi1>
    %34 = vector.broadcast %cst_16 : f32 to vector<8x128xf32>
    %35 = arith.select %33, %23, %34 : vector<8x128xi1>, vector<8x128xf32>
    %cst_17 = arith.constant dense<0.000000e+00> : vector<8xf32>
    %36 = vector.multi_reduction <add>, %35, %cst_17 [1] : vector<8x128xf32> to vector<8xf32>
    %37 = vector.shape_cast %36 : vector<8xf32> to vector<8x1xf32>
    %cst_18 = arith.constant 0.000000e+00 : f32
    %38 = vector.shape_cast %31 : vector<1x128xi1> to vector<1x128xi1>
    %39 = vector.broadcast %38 : vector<1x128xi1> to vector<8x128xi1>
    %40 = vector.broadcast %cst_18 : f32 to vector<8x128xf32>
    %41 = arith.select %39, %23, %40 : vector<8x128xi1>, vector<8x128xf32>
    %cst_19 = arith.constant dense<0.000000e+00> : vector<8xf32>
    %42 = vector.multi_reduction <add>, %41, %cst_19 [1] : vector<8x128xf32> to vector<8xf32>
    %43 = vector.shape_cast %42 : vector<8xf32> to vector<8x1xf32>
    %44 = tpu.reciprocal %37 {approx = true} : vector<8x1xf32> -> vector<8x1xf32>
    %45 = arith.mulf %37, %44 : vector<8x1xf32>
    %cst_20 = arith.constant 2.000000e+00 : f32
    %46 = vector.broadcast %cst_20 : f32 to vector<8x1xf32>
    %47 = arith.subf %46, %45 : vector<8x1xf32>
    %48 = arith.mulf %44, %47 : vector<8x1xf32>
    %49 = arith.mulf %37, %48 : vector<8x1xf32>
    %cst_21 = arith.constant 2.000000e+00 : f32
    %50 = vector.broadcast %cst_21 : f32 to vector<8x1xf32>
    %51 = arith.subf %50, %49 : vector<8x1xf32>
    %52 = arith.mulf %48, %51 : vector<8x1xf32>
    %cst_22 = arith.constant 0.000000e+00 : f32
    %53 = vector.shape_cast %26 : vector<1x128xi1> to vector<1x128xi1>
    %54 = vector.broadcast %53 : vector<1x128xi1> to vector<8x128xi1>
    %55 = vector.shape_cast %52 : vector<8x1xf32> to vector<8x1xf32>
    %56 = vector.broadcast %55 : vector<8x1xf32> to vector<8x128xf32>
    %57 = vector.broadcast %cst_22 : f32 to vector<8x128xf32>
    %58 = arith.select %54, %56, %57 : vector<8x128xi1>, vector<8x128xf32>
    %59 = tpu.reciprocal %43 {approx = true} : vector<8x1xf32> -> vector<8x1xf32>
    %60 = arith.mulf %43, %59 : vector<8x1xf32>
    %cst_23 = arith.constant 2.000000e+00 : f32
    %61 = vector.broadcast %cst_23 : f32 to vector<8x1xf32>
    %62 = arith.subf %61, %60 : vector<8x1xf32>
    %63 = arith.mulf %59, %62 : vector<8x1xf32>
    %64 = arith.mulf %43, %63 : vector<8x1xf32>
    %cst_24 = arith.constant 2.000000e+00 : f32
    %65 = vector.broadcast %cst_24 : f32 to vector<8x1xf32>
    %66 = arith.subf %65, %64 : vector<8x1xf32>
    %67 = arith.mulf %63, %66 : vector<8x1xf32>
    %cst_25 = arith.constant 0.000000e+00 : f32
    %68 = vector.shape_cast %31 : vector<1x128xi1> to vector<1x128xi1>
    %69 = vector.broadcast %68 : vector<1x128xi1> to vector<8x128xi1>
    %70 = vector.shape_cast %67 : vector<8x1xf32> to vector<8x1xf32>
    %71 = vector.broadcast %70 : vector<8x1xf32> to vector<8x128xf32>
    %72 = vector.broadcast %cst_25 : f32 to vector<8x128xf32>
    %73 = arith.select %69, %71, %72 : vector<8x128xi1>, vector<8x128xf32>
    %74 = arith.addf %58, %73 : vector<8x128xf32>
    %75 = arith.mulf %23, %74 : vector<8x128xf32>
    %c2 = arith.constant 2 : index
    %c0_26 = arith.constant 0 : index
    %c0_27 = arith.constant 0 : index
    %76 = vector.load %arg2[%c2, %c0_26, %c0_27] : memref<5x128x128xbf16, #tpu.memory_space<vmem>>, vector<1x128x128xbf16>
    %77 = vector.shape_cast %76 : vector<1x128x128xbf16> to vector<128x128xbf16>
    %c2_28 = arith.constant 2 : index
    %c0_29 = arith.constant 0 : index
    %c0_30 = arith.constant 0 : index
    %78 = vector.load %arg3[%c2_28, %c0_29, %c0_30] : memref<5x1x128xf32, #tpu.memory_space<vmem>>, vector<1x1x128xf32>
    %79 = vector.shape_cast %78 : vector<1x1x128xf32> to vector<1x128xf32>
    %80 = arith.truncf %75 : vector<8x128xf32> to vector<8x128xbf16>
    %cst_31 = arith.constant dense<0.000000e+00> : vector<8x128xf32>
    %81 = tpu.matmul %80, %77, %cst_31 {dimension_numbers = #tpu.dot_dimension_numbers<[1], [0], [0], [1], [0, 0, 1, 1], [], []>} : vector<8x128xbf16>, vector<128x128xbf16>, vector<8x128xf32> -> vector<8x128xf32>
    %82 = vector.broadcast %79 : vector<1x128xf32> to vector<8x128xf32>
    %83 = arith.addf %81, %82 : vector<8x128xf32>
    %cst_32 = arith.constant 0.000000e+00 : f32
    %84 = vector.broadcast %cst_32 : f32 to vector<8x128xf32>
    %85 = arith.maximumf %83, %84 : vector<8x128xf32>
    %c3 = arith.constant 3 : index
    %c0_33 = arith.constant 0 : index
    %c0_34 = arith.constant 0 : index
    %86 = vector.load %arg2[%c3, %c0_33, %c0_34] : memref<5x128x128xbf16, #tpu.memory_space<vmem>>, vector<1x128x128xbf16>
    %87 = vector.shape_cast %86 : vector<1x128x128xbf16> to vector<128x128xbf16>
    %c3_35 = arith.constant 3 : index
    %c0_36 = arith.constant 0 : index
    %c0_37 = arith.constant 0 : index
    %88 = vector.load %arg3[%c3_35, %c0_36, %c0_37] : memref<5x1x128xf32, #tpu.memory_space<vmem>>, vector<1x1x128xf32>
    %89 = vector.shape_cast %88 : vector<1x1x128xf32> to vector<1x128xf32>
    %90 = arith.truncf %85 : vector<8x128xf32> to vector<8x128xbf16>
    %cst_38 = arith.constant dense<0.000000e+00> : vector<8x128xf32>
    %91 = tpu.matmul %90, %87, %cst_38 {dimension_numbers = #tpu.dot_dimension_numbers<[1], [0], [0], [1], [0, 0, 1, 1], [], []>} : vector<8x128xbf16>, vector<128x128xbf16>, vector<8x128xf32> -> vector<8x128xf32>
    %92 = vector.broadcast %89 : vector<1x128xf32> to vector<8x128xf32>
    %93 = arith.addf %91, %92 : vector<8x128xf32>
    %cst_39 = arith.constant 0.000000e+00 : f32
    %94 = vector.broadcast %cst_39 : f32 to vector<8x128xf32>
    %95 = arith.maximumf %93, %94 : vector<8x128xf32>
    %c4 = arith.constant 4 : index
    %c0_40 = arith.constant 0 : index
    %c0_41 = arith.constant 0 : index
    %96 = vector.load %arg2[%c4, %c0_40, %c0_41] : memref<5x128x128xbf16, #tpu.memory_space<vmem>>, vector<1x128x128xbf16>
    %97 = vector.shape_cast %96 : vector<1x128x128xbf16> to vector<128x128xbf16>
    %c4_42 = arith.constant 4 : index
    %c0_43 = arith.constant 0 : index
    %c0_44 = arith.constant 0 : index
    %98 = vector.load %arg3[%c4_42, %c0_43, %c0_44] : memref<5x1x128xf32, #tpu.memory_space<vmem>>, vector<1x1x128xf32>
    %99 = vector.shape_cast %98 : vector<1x1x128xf32> to vector<1x128xf32>
    %100 = arith.truncf %95 : vector<8x128xf32> to vector<8x128xbf16>
    %cst_45 = arith.constant dense<0.000000e+00> : vector<8x128xf32>
    %101 = tpu.matmul %100, %97, %cst_45 {dimension_numbers = #tpu.dot_dimension_numbers<[1], [0], [0], [1], [0, 0, 1, 1], [], []>} : vector<8x128xbf16>, vector<128x128xbf16>, vector<8x128xf32> -> vector<8x128xf32>
    %102 = vector.broadcast %99 : vector<1x128xf32> to vector<8x128xf32>
    %103 = arith.addf %101, %102 : vector<8x128xf32>
    %104 = arith.addf %75, %103 : vector<8x128xf32>
    %c0_46 = arith.constant 0 : index
    %c0_47 = arith.constant 0 : index
    %105 = vector.load %arg4[%c0_46, %c0_47] : memref<8x128xf32, #tpu.memory_space<vmem>>, vector<8x128xf32>
    tpu.vector_store %arg4[%c0_46, %c0_47], %104 {strides = array<i32>} : memref<8x128xf32, #tpu.memory_space<vmem>>, vector<8x128xf32>,
    return
  }
  func.func @transform_0(%arg0: i32) -> (i32, i32) {
    %c0_i32 = arith.constant 0 : i32
    %c0_i32_0 = arith.constant 0 : i32
    return %arg0, %c0_i32 : i32, i32
  }
  func.func @transform_1(%arg0: i32) -> (i32, i32, i32) {
    %c0_i32 = arith.constant 0 : i32
    %c0_i32_0 = arith.constant 0 : i32
    %c0_i32_1 = arith.constant 0 : i32
    %c0_i32_2 = arith.constant 0 : i32
    return %c0_i32, %c0_i32_0, %c0_i32_1 : i32, i32, i32
  }
  func.func @transform_2(%arg0: i32) -> (i32, i32, i32) {
    %c0_i32 = arith.constant 0 : i32
    %c0_i32_0 = arith.constant 0 : i32
    %c0_i32_1 = arith.constant 0 : i32
    %c0_i32_2 = arith.constant 0 : i32
    return %c0_i32, %c0_i32_0, %c0_i32_1 : i32, i32, i32
  }
  func.func @transform_3(%arg0: i32) -> (i32, i32) {
    %c0_i32 = arith.constant 0 : i32
    %c0_i32_0 = arith.constant 0 : i32
    return %arg0, %c0_i32 : i32, i32
  }
}

module attributes {stable_mosaic.version = 11 : i64} {
  func.func @dual_pmf_kernel(%arg0: i32, %arg1: memref<8x32xf32, #tpu.memory_space<vmem>>, %arg2: memref<5x128x128xbf16, #tpu.memory_space<vmem>>, %arg3: memref<5x1x128xf32, #tpu.memory_space<vmem>>, %arg4: memref<8x128xf32, #tpu.memory_space<vmem>>) attributes {dimension_semantics = [#tpu.dimension_semantics<parallel>], iteration_bounds = array<i64: 2>, scalar_prefetch = 0 : i64, scratch_operands = 0 : i64, tpu.core_type = #tpu.core_type<tc>, window_params = [{transform_indices = @transform_0, window_bounds = array<i64: 8, 32>}, {pipeline_mode = #tpu.pipeline_mode<synchronous>, transform_indices = @transform_1, window_bounds = array<i64: 5, 128, 128>}, {pipeline_mode = #tpu.pipeline_mode<synchronous>, transform_indices = @transform_2, window_bounds = array<i64: 5, 1, 128>}, {transform_indices = @transform_3, window_bounds = array<i64: 8, 128>}]} {
    %c0 = arith.constant 0 : index
    %c0_0 = arith.constant 0 : index
    %0 = vector.load %arg1[%c0, %c0_0] : memref<8x32xf32, #tpu.memory_space<vmem>>, vector<8x32xf32>
    %c0_1 = arith.constant 0 : index
    %c0_2 = arith.constant 0 : index
    %c0_3 = arith.constant 0 : index
    %1 = vector.load %arg2[%c0_1, %c0_2, %c0_3] : memref<5x128x128xbf16, #tpu.memory_space<vmem>>, vector<1x32x128xbf16>
    %2 = vector.shape_cast %1 : vector<1x32x128xbf16> to vector<32x128xbf16>
    %c0_4 = arith.constant 0 : index
    %c0_5 = arith.constant 0 : index
    %c0_6 = arith.constant 0 : index
    %3 = vector.load %arg3[%c0_4, %c0_5, %c0_6] : memref<5x1x128xf32, #tpu.memory_space<vmem>>, vector<1x1x128xf32>
    %4 = vector.shape_cast %3 : vector<1x1x128xf32> to vector<1x128xf32>
    %5 = arith.truncf %0 : vector<8x32xf32> to vector<8x32xbf16>
    %cst = arith.constant dense<0.000000e+00> : vector<8x128xf32>
    %6 = tpu.matmul %5, %2, %cst {dimension_numbers = #tpu.dot_dimension_numbers<[1], [0], [0], [1], [0, 0, 1, 1], [], []>} : vector<8x32xbf16>, vector<32x128xbf16>, vector<8x128xf32> -> vector<8x128xf32>
    %7 = vector.broadcast %4 : vector<1x128xf32> to vector<8x128xf32>
    %8 = arith.addf %6, %7 : vector<8x128xf32>
    %cst_7 = arith.constant 0.000000e+00 : f32
    %9 = vector.broadcast %cst_7 : f32 to vector<8x128xf32>
    %10 = arith.maximumf %8, %9 : vector<8x128xf32>
    %c1 = arith.constant 1 : index
    %c0_8 = arith.constant 0 : index
    %c0_9 = arith.constant 0 : index
    %11 = vector.load %arg2[%c1, %c0_8, %c0_9] : memref<5x128x128xbf16, #tpu.memory_space<vmem>>, vector<1x128x128xbf16>
    %12 = vector.shape_cast %11 : vector<1x128x128xbf16> to vector<128x128xbf16>
    %c1_10 = arith.constant 1 : index
    %c0_11 = arith.constant 0 : index
    %c0_12 = arith.constant 0 : index
    %13 = vector.load %arg3[%c1_10, %c0_11, %c0_12] : memref<5x1x128xf32, #tpu.memory_space<vmem>>, vector<1x1x128xf32>
    %14 = vector.shape_cast %13 : vector<1x1x128xf32> to vector<1x128xf32>
    %15 = arith.truncf %10 : vector<8x128xf32> to vector<8x128xbf16>
    %cst_13 = arith.constant dense<0.000000e+00> : vector<8x128xf32>
    %16 = tpu.matmul %15, %12, %cst_13 {dimension_numbers = #tpu.dot_dimension_numbers<[1], [0], [0], [1], [0, 0, 1, 1], [], []>} : vector<8x128xbf16>, vector<128x128xbf16>, vector<8x128xf32> -> vector<8x128xf32>
    %17 = vector.broadcast %14 : vector<1x128xf32> to vector<8x128xf32>
    %18 = arith.addf %16, %17 : vector<8x128xf32>
    %19 = arith.negf %18 : vector<8x128xf32>
    %20 = math.exp %19 : vector<8x128xf32>
    %cst_14 = arith.constant 1.000000e+00 : f32
    %21 = vector.broadcast %cst_14 : f32 to vector<8x128xf32>
    %22 = arith.addf %21, %20 : vector<8x128xf32>
    %23 = arith.divf %21, %22 : vector<8x128xf32>
    %24 = tpu.iota {dimensions = array<i32: 1>} : vector<1x128xi32>
    %c20_i32 = arith.constant 20 : i32
    %25 = vector.broadcast %c20_i32 : i32 to vector<1x128xi32>
    %26 = arith.cmpi slt, %24, %25 : vector<1x128xi32>
    %c20_i32_15 = arith.constant 20 : i32
    %27 = vector.broadcast %c20_i32_15 : i32 to vector<1x128xi32>
    %28 = arith.cmpi sge, %24, %27 : vector<1x128xi32>
    %c40_i32 = arith.constant 40 : i32
    %29 = vector.broadcast %c40_i32 : i32 to vector<1x128xi32>
    %30 = arith.cmpi slt, %24, %29 : vector<1x128xi32>
    %31 = arith.andi %28, %30 : vector<1x128xi1>
    %cst_16 = arith.constant 0.000000e+00 : f32
    %32 = vector.shape_cast %26 : vector<1x128xi1> to vector<1x128xi1>
    %33 = vector.broadcast %32 : vector<1x128xi1> to vector<8x128xi1>
    %34 = vector.broadcast %cst_16 : f32 to vector<8x128xf32>
    %35 = arith.select %33, %23, %34 : vector<8x128xi1>, vector<8x128xf32>
    %cst_17 = arith.constant dense<0.000000e+00> : vector<8xf32>
    %36 = vector.multi_reduction <add>, %35, %cst_17 [1] : vector<8x128xf32> to vector<8xf32>
    %37 = vector.shape_cast %36 : vector<8xf32> to vector<8x1xf32>
    %cst_18 = arith.constant 0.000000e+00 : f32
    %38 = vector.shape_cast %31 : vector<1x128xi1> to vector<1x128xi1>
    %39 = vector.broadcast %38 : vector<1x128xi1> to vector<8x128xi1>
    %40 = vector.broadcast %cst_18 : f32 to vector<8x128xf32>
    %41 = arith.select %39, %23, %40 : vector<8x128xi1>, vector<8x128xf32>
    %cst_19 = arith.constant dense<0.000000e+00> : vector<8xf32>
    %42 = vector.multi_reduction <add>, %41, %cst_19 [1] : vector<8x128xf32> to vector<8xf32>
    %43 = vector.shape_cast %42 : vector<8xf32> to vector<8x1xf32>
    %44 = tpu.reciprocal %37 {approx = true} : vector<8x1xf32> -> vector<8x1xf32>
    %45 = arith.mulf %37, %44 : vector<8x1xf32>
    %cst_20 = arith.constant 2.000000e+00 : f32
    %46 = vector.broadcast %cst_20 : f32 to vector<8x1xf32>
    %47 = arith.subf %46, %45 : vector<8x1xf32>
    %48 = arith.mulf %44, %47 : vector<8x1xf32>
    %49 = arith.mulf %37, %48 : vector<8x1xf32>
    %cst_21 = arith.constant 2.000000e+00 : f32
    %50 = vector.broadcast %cst_21 : f32 to vector<8x1xf32>
    %51 = arith.subf %50, %49 : vector<8x1xf32>
    %52 = arith.mulf %48, %51 : vector<8x1xf32>
    %cst_22 = arith.constant 0.000000e+00 : f32
    %53 = vector.shape_cast %26 : vector<1x128xi1> to vector<1x128xi1>
    %54 = vector.broadcast %53 : vector<1x128xi1> to vector<8x128xi1>
    %55 = vector.shape_cast %52 : vector<8x1xf32> to vector<8x1xf32>
    %56 = vector.broadcast %55 : vector<8x1xf32> to vector<8x128xf32>
    %57 = vector.broadcast %cst_22 : f32 to vector<8x128xf32>
    %58 = arith.select %54, %56, %57 : vector<8x128xi1>, vector<8x128xf32>
    %59 = tpu.reciprocal %43 {approx = true} : vector<8x1xf32> -> vector<8x1xf32>
    %60 = arith.mulf %43, %59 : vector<8x1xf32>
    %cst_23 = arith.constant 2.000000e+00 : f32
    %61 = vector.broadcast %cst_23 : f32 to vector<8x1xf32>
    %62 = arith.subf %61, %60 : vector<8x1xf32>
    %63 = arith.mulf %59, %62 : vector<8x1xf32>
    %64 = arith.mulf %43, %63 : vector<8x1xf32>
    %cst_24 = arith.constant 2.000000e+00 : f32
    %65 = vector.broadcast %cst_24 : f32 to vector<8x1xf32>
    %66 = arith.subf %65, %64 : vector<8x1xf32>
    %67 = arith.mulf %63, %66 : vector<8x1xf32>
    %cst_25 = arith.constant 0.000000e+00 : f32
    %68 = vector.shape_cast %31 : vector<1x128xi1> to vector<1x128xi1>
    %69 = vector.broadcast %68 : vector<1x128xi1> to vector<8x128xi1>
    %70 = vector.shape_cast %67 : vector<8x1xf32> to vector<8x1xf32>
    %71 = vector.broadcast %70 : vector<8x1xf32> to vector<8x128xf32>
    %72 = vector.broadcast %cst_25 : f32 to vector<8x128xf32>
    %73 = arith.select %69, %71, %72 : vector<8x128xi1>, vector<8x128xf32>
    %74 = arith.addf %58, %73 : vector<8x128xf32>
    %75 = arith.mulf %23, %74 : vector<8x128xf32>
    %c2 = arith.constant 2 : index
    %c0_26 = arith.constant 0 : index
    %c0_27 = arith.constant 0 : index
    %76 = vector.load %arg2[%c2, %c0_26, %c0_27] : memref<5x128x128xbf16, #tpu.memory_space<vmem>>, vector<1x128x128xbf16>
    %77 = vector.shape_cast %76 : vector<1x128x128xbf16> to vector<128x128xbf16>
    %c2_28 = arith.constant 2 : index
    %c0_29 = arith.constant 0 : index
    %c0_30 = arith.constant 0 : index
    %78 = vector.load %arg3[%c2_28, %c0_29, %c0_30] : memref<5x1x128xf32, #tpu.memory_space<vmem>>, vector<1x1x128xf32>
    %79 = vector.shape_cast %78 : vector<1x1x128xf32> to vector<1x128xf32>
    %80 = arith.truncf %75 : vector<8x128xf32> to vector<8x128xbf16>
    %cst_31 = arith.constant dense<0.000000e+00> : vector<8x128xf32>
    %81 = tpu.matmul %80, %77, %cst_31 {dimension_numbers = #tpu.dot_dimension_numbers<[1], [0], [0], [1], [0, 0, 1, 1], [], []>} : vector<8x128xbf16>, vector<128x128xbf16>, vector<8x128xf32> -> vector<8x128xf32>
    %82 = vector.broadcast %79 : vector<1x128xf32> to vector<8x128xf32>
    %83 = arith.addf %81, %82 : vector<8x128xf32>
    %cst_32 = arith.constant 0.000000e+00 : f32
    %84 = vector.broadcast %cst_32 : f32 to vector<8x128xf32>
    %85 = arith.maximumf %83, %84 : vector<8x128xf32>
    %c3 = arith.constant 3 : index
    %c0_33 = arith.constant 0 : index
    %c0_34 = arith.constant 0 : index
    %86 = vector.load %arg2[%c3, %c0_33, %c0_34] : memref<5x128x128xbf16, #tpu.memory_space<vmem>>, vector<1x128x128xbf16>
    %87 = vector.shape_cast %86 : vector<1x128x128xbf16> to vector<128x128xbf16>
    %c3_35 = arith.constant 3 : index
    %c0_36 = arith.constant 0 : index
    %c0_37 = arith.constant 0 : index
    %88 = vector.load %arg3[%c3_35, %c0_36, %c0_37] : memref<5x1x128xf32, #tpu.memory_space<vmem>>, vector<1x1x128xf32>
    %89 = vector.shape_cast %88 : vector<1x1x128xf32> to vector<1x128xf32>
    %90 = arith.truncf %85 : vector<8x128xf32> to vector<8x128xbf16>
    %cst_38 = arith.constant dense<0.000000e+00> : vector<8x128xf32>
    %91 = tpu.matmul %90, %87, %cst_38 {dimension_numbers = #tpu.dot_dimension_numbers<[1], [0], [0], [1], [0, 0, 1, 1], [], []>} : vector<8x128xbf16>, vector<128x128xbf16>, vector<8x128xf32> -> vector<8x128xf32>
    %92 = vector.broadcast %89 : vector<1x128xf32> to vector<8x128xf32>
    %93 = arith.addf %91, %92 : vector<8x128xf32>
    %cst_39 = arith.constant 0.000000e+00 : f32
    %94 = vector.broadcast %cst_39 : f32 to vector<8x128xf32>
    %95 = arith.maximumf %93, %94 : vector<8x128xf32>
    %c4 = arith.constant 4 : index
    %c0_40 = arith.constant 0 : index
    %c0_41 = arith.constant 0 : index
    %96 = vector.load %arg2[%c4, %c0_40, %c0_41] : memref<5x128x128xbf16, #tpu.memory_space<vmem>>, vector<1x128x128xbf16>
    %97 = vector.shape_cast %96 : vector<1x128x128xbf16> to vector<128x128xbf16>
    %c4_42 = arith.constant 4 : index
    %c0_43 = arith.constant 0 : index
    %c0_44 = arith.constant 0 : index
    %98 = vector.load %arg3[%c4_42, %c0_43, %c0_44] : memref<5x1x128xf32, #tpu.memory_space<vmem>>, vector<1x1x128xf32>
    %99 = vector.shape_cast %98 : vector<1x1x128xf32> to vector<1x128xf32>
    %100 = arith.truncf %95 : vector<8x128xf32> to vector<8x128xbf16>
    %cst_45 = arith.constant dense<0.000000e+00> : vector<8x128xf32>
    %101 = tpu.matmul %100, %97, %cst_45 {dimension_numbers = #tpu.dot_dimension_numbers<[1], [0], [0], [1], [0, 0, 1, 1], [], []>} : vector<8x128xbf16>, vector<128x128xbf16>, vector<8x128xf32> -> vector<8x128xf32>
    %102 = vector.broadcast %99 : vector<1x128xf32> to vector<8x128xf32>
    %103 = arith.addf %101, %102 : vector<8x128xf32>
    %104 = arith.addf %75, %103 : vector<8x128xf32>
    %c0_46 = arith.constant 0 : index
    %c0_47 = arith.constant 0 : index
    %105 = vector.load %arg4[%c0_46, %c0_47] : memref<8x128xf32, #tpu.memory_space<vmem>>, vector<8x128xf32>
    tpu.vector_store %arg4[%c0_46, %c0_47], %104 {strides = array<i32>} : memref<8x128xf32, #tpu.memory_space<vmem>>, vector<8x128xf32>,
    return
  }
  func.func @transform_0(%arg0: i32) -> (i32, i32) {
    %c0_i32 = arith.constant 0 : i32
    %c0_i32_0 = arith.constant 0 : i32
    return %arg0, %c0_i32 : i32, i32
  }
  func.func @transform_1(%arg0: i32) -> (i32, i32, i32) {
    %c0_i32 = arith.constant 0 : i32
    %c0_i32_0 = arith.constant 0 : i32
    %c0_i32_1 = arith.constant 0 : i32
    %c0_i32_2 = arith.constant 0 : i32
    return %c0_i32, %c0_i32_0, %c0_i32_1 : i32, i32, i32
  }
  func.func @transform_2(%arg0: i32) -> (i32, i32, i32) {
    %c0_i32 = arith.constant 0 : i32
    %c0_i32_0 = arith.constant 0 : i32
    %c0_i32_1 = arith.constant 0 : i32
    %c0_i32_2 = arith.constant 0 : i32
    return %c0_i32, %c0_i32_0, %c0_i32_1 : i32, i32, i32
  }
  func.func @transform_3(%arg0: i32) -> (i32, i32) {
    %c0_i32 = arith.constant 0 : i32
    %c0_i32_0 = arith.constant 0 : i32
    return %arg0, %c0_i32 : i32, i32
  }
}

</mosaic_0001>

<bundles_post_ra>
// kernel: tpu_custom_call.1
= control target key start
LH: loop header
LB: loop body
LE: loop exit
PB: predicated region body
PF: predicated region fallthrough
CT: control target
= control target key end

     0   :  { %8 = vsyncpa [#allocation3], 0  ;;  %s1593_s0 = inlined_call_operand.hbm [shape: f32[16,32], index: 0, kind: input, shape index: {}]   ;;  %s1594_s1 = inlined_call_operand.hbm [shape: bf16[5,128,128], index: 1, kind: input, shape index: {}]   ;;  %s1595_s2 = inlined_call_operand.vmem [shape: f32[5,1,128], index: 2, kind: input, shape index: {}]   ;;  %s1596_s3 = inlined_call_operand.hbm [shape: f32[16,128], index: 3, kind: output, shape index: {}]  }
   0x1   :  { %10 = vsyncpa [#allocation3 + $0x1], 0 }
   0x2   :  { %11 = vsyncpa [#allocation6], 0 }
   0x3   :  { %12 = vsyncpa [#allocation4], 0 }
   0x4   :  { %14 = vsyncpa [#allocation4 + $0x1], 0  ;;  %s1312_s12 = smov 0   ;;  %s1314_s13 = smov 0  }
   0x5   :  { %s1316_s14 = smov 0   ;;  %s1318_s15 = smov 0  }
   0x6 LB: > { %s1333_s16 = sadd.s32 4294967295, %s1283_s15   ;;  %s866_s17 = sadd.s32 4294967294, %s1283_s15   ;;  %s1283_s15 = sphi %s1318_s15, %s1618_s15   ;;  %s1279_s14 = sphi %s1316_s14, %s1617_s14   ;;  %s1275_s13 = sphi %s1314_s13, %s1616_s13   ;;  %s1271_s12 = sphi %s1312_s12, %s1615_s12  }
   0x7   : > { %p40_p0 = scmp.ne.s32.totalorder %s1275_s13, %s1271_s12  ;;  %p1597_p1 = scmp.eq.s32.totalorder %s1333_s16, 0 }
   0x8   : > { %p112_p3 = scmp.eq.s32.totalorder %s866_s17, 1  ;;  %p867_p5 = scmp.ge.s32.totalorder %s1283_s15, 1 }
   0x9   : > { %p1342_p4 = por %p1597_p1, %p40_p0  ;;  %p119_p7 = scmp.lt.s32.totalorder %s1283_s15, 3 }
   0xa   : > { %p1347_p6 = por %p112_p3, %p40_p0  ;;  %s1285_s21 = smov [#allocation5]  }
   0xb   : > { %s1600_s18 = scalar_select %p1342_p4, 1, 0 }
   0xc   : > { %s1601_s19 = scalar_select %p1347_p6, 1, 0 }
   0xd   : > { %p1352_p8 = pnand %p867_p5, %p119_p7  ;;  %s131_s22 = sshll.u32 %s1285_s21, 4  ;;  %s1356_s22 = int_to_ptr.vmem [resolvable:$true] %s131_s22 }
   0xe   : > { %s1368_s24 = sadd.s32 1, %s1283_s15   ;;  %s27_s25 = sadd.s32 1, %s1279_s14 }
   0xf   : > { %s1602_s20 = scalar_select %p1352_p8, 1, 0 }
  0x10   : > { %p1060_p9 = pneg %p1352_p8  ;;  %s24_s26 = ssub.s32 %s1283_s15, %s1368_s24 }
  0x11   : > { %s1155_s29 = scalar_lea.hbm %s1594_s1, 5120 }
  0x12   : > { %p1363_p11 = pnand %p1060_p9, %p1597_p1  ;;  %p1156_p12 = scmp.ne.s32.totalorder %s1594_s1, %s1155_s29 }
  0x13   : > { %p1162_p5 = scmp.lt.u32.totalorder %s1155_s29, %s1594_s1 }
  0x14   : > { %p1157_p13 = pneg %p1363_p11 }
  0x16   : > { %p1158_p0 = pnand %p1157_p13, %p1156_p12 }
  0x18   : > { %p1159_p3 = pneg %p1158_p0 }
  0x1a   : > { %p1164_p7 = pnand %p1162_p5, %p1159_p3 }
  0x1c   : > { %1167 = shalt.err (!%p1164_p7)
}
  0x1d   : > { %s1168_s7 = scalar_lea.vmem %s1356_s22, 5120  ;;  %p1176_p2 = scmp.lt.s32.totalorder %s1356_s22, %s1356_s22 }
  0x1e   : > { %p1169_p9 = scmp.ne.s32.totalorder %s1356_s22, %s1168_s7  ;;  %p1177_p6 = scmp.lt.s32.totalorder %s1168_s7, %s1168_s7 }
  0x20   : > { %p1171_p10 = pnand %p1169_p9, %p1157_p13  ;;  %p1178_p4 = por %p1177_p6, %p1176_p2 }
  0x22   : > { %p1172_p1 = pneg %p1171_p10 }
  0x24   : > { %p1179_p8 = pnand %p1178_p4, %p1172_p1 }
  0x26   : > { %1182 = shalt.err (!%p1179_p8)
}
  0x27   : > { %s1286_s8 = smov 64   ;;  %s1287_s9 = smov 4  }
  0x28   : > { %1063 = dma.hbm_to_vmem [thread:$0]  (!%p1363_p11), %s1594_s1, 5120, %s1356_s22, [#allocation6], %s1286_s8, %s1286_s8, %s1287_s9  }
  0x29   : > { %p25_p2 = scmp.eq.s32.totalorder %s24_s26, 0  ;;  %p34_p1 = scmp.ne.s32.totalorder %s1279_s14, %s1275_s13 }
  0x2a   : > { %p35_p4 = scmp.eq.s32.totalorder %s1283_s15, 0  ;;  %p1073_p6 = scmp.lt.s32.totalorder %s1283_s15, 2 }
  0x2b   : > { %s1399_s17 = scalar_select %p25_p2, %s1279_s14, %s27_s25  }
  0x2c   : > { %p36_p8 = por %p35_p4, %p34_p1  ;;  %p1604_p10 = scmp.eq.s32.totalorder %s1333_s16, 1 }
  0x2d   : > { %s148_s27 = sand.u32 1, %s1279_s14   ;;  %s871_s28 = sshll.u32 %s1283_s15, 7 }
  0x2e   : > { %p1403_p12 = por %p1604_p10, %p34_p1  ;;  %s870_s29 = sshll.u32 %s148_s27, 3 }
  0x2f   : > { %s1412_s4 = scalar_lea.hbm %s1593_s0, %s871_s28  ;;  %s152_s22 = scalar_lea.vmem [#allocation2], %s870_s29 }
  0x30   : > { %s159_s25 = sshll.u32 %s152_s22, 4  ;;  %p1414_p11 = pnand %p1073_p6, %p36_p8  ;;  %s1418_s25 = int_to_ptr.vmem [resolvable:$true] %s159_s25 }
  0x31   : > { %s149_s5 = scalar_lea.sflag [#allocation3], %s148_s27  ;;  %s1183_s6 = scalar_lea.hbm %s1412_s4, 128 }
  0x32   : > { %p1184_p13 = scmp.ne.s32.totalorder %s1412_s4, %s1183_s6  ;;  %p1185_p0 = pneg %p1414_p11 }
  0x33   : > { %s1188_s9 = scalar_lea.hbm %s1593_s0, 256  ;;  %p1189_p7 = scmp.lt.u32.totalorder %s1412_s4, %s1593_s0 }
  0x34   : > { %p1186_p3 = pnand %p1185_p0, %p1184_p13  ;;  %p1190_p9 = scmp.lt.u32.totalorder %s1188_s9, %s1183_s6 }
  0x35   : > { %p1192_p1 = scmp.lt.u32.totalorder %s1183_s6, %s1412_s4 }
  0x36   : > { %p1187_p5 = pneg %p1186_p3  ;;  %p1191_p2 = por %p1190_p9, %p1189_p7 }
  0x38   : > { %p1193_p4 = por %p1192_p1, %p1191_p2 }
  0x3a   : > { %p1194_p6 = pnand %p1193_p4, %p1187_p5 }
  0x3c   : > { %1197 = shalt.err (!%p1194_p6)
}
  0x3d   : > { %s1198_s27 = scalar_lea.vmem %s1418_s25, 128  ;;  %s1288_s28 = smov [#allocation2]  }
  0x3e   : > { %p1199_p8 = scmp.ne.s32.totalorder %s1418_s25, %s1198_s27  ;;  %s1203_s29 = sshll.u32 %s1288_s28, 4  ;;  %s1204_s29 = int_to_ptr.vmem [resolvable:$false] %s1203_s29 }
  0x3f   : > { %s1205_s23 = scalar_lea.vmem %s1204_s29, 256  ;;  %p1206_p3 = scmp.lt.s32.totalorder %s1418_s25, %s1204_s29 }
  0x40   : > { %p1201_p10 = pnand %p1199_p8, %p1185_p0  ;;  %p1207_p7 = scmp.lt.s32.totalorder %s1205_s23, %s1198_s27 }
  0x42   : > { %p1202_p13 = pneg %p1201_p10  ;;  %p1208_p9 = por %p1207_p7, %p1206_p3 }
  0x44   : > { %p1209_p2 = pnand %p1208_p9, %p1202_p13 }
  0x46   : > { %1212 = shalt.err (!%p1209_p2)
}
  0x47   : > { %1067 = dma.hbm_to_vmem [thread:$0]  (!%p1414_p11), %s1412_s4, 128, %s1418_s25, %s149_s5  }
  0x48   : > { %p1607_p5 = scmp.ne.s32.totalorder %s1602_s20, 0 }
  0x49   : > { %s1448_s30 = sand.u32 (!%p1607_p5), 1, %s1275_s13   ;;  %p1608_p0 = scmp.ne.s32.totalorder (!%p1607_p5), %s1600_s18, 0 }
  0x4a   : > { %168 = sbr.rel (%p1607_p5) target bundleno = 1396 (0x574), region = 32  ;;  %s873_s22 = sshll.u32 (!%p1607_p5), %s1448_s30, 3 }
  0x4b   : > { %s171_s6 = scalar_lea.sflag (!%p1607_p5), [#allocation3], %s1448_s30  ;;  %s174_s7 = scalar_lea.vmem (!%p1607_p5), [#allocation2], %s873_s22 }
  0x51   : > { %1258 = dma.done.wait (%p1608_p0), %s171_s6, 128  }
  0x52   : > { %1260 = vsyncadd (%p1608_p0), %s171_s6, 4294967168  ;;  %p1609_p11 = scmp.eq.s32.totalorder %s1333_s16, 0 }
  0x54   : > { %1262 = dma.done.wait (%p1609_p11), [#allocation6], 5120   ;;  %p1610_p1 = pmov %p1609_p11 }
  0x55   : > { %v1289_v0 = vmov 0.0   ;;  %vm1290_vm0 = vmmov 0   ;;  %v1113_v1 = vld [vmem:[#allocation5] sm:$0xff]   ;;  %v1114_v2 = vld [vmem:[#allocation5 + $0x8] sm:$0xff]   ;;  %v202_v3 = vld [vmem:[%s174_s7] sm:$0xff]  ;;  %vm227_vm1 = vcmask 261120   ;;  %v392_v30 = vlaneseq }
  0x56   : > { %1264 = vsyncadd (%p1610_p1), [#allocation6], 4294962176  ;;  %964 = vmatprep.subr.bf16.mxu0 %v1289_v0  ;;  %968 = vmatprep.mubr.msk.bf16.mxu0 %vm1290_vm0, %v1289_v0  ;;  %v1115_v4 = vld [vmem:[#allocation5 + $0x40] sm:$0xff]   ;;  %v208_v5 = vpack.c.bf16 %v202_v3, %v202_v3  ;;  %v1116_v6 = vld [vmem:[#allocation5 + $0x48] sm:$0xff]   ;;  %s922_s27 = sshll.u32 %s1333_s16, 7  ;;  %s200_s28 = scalar_lea.vmem [#allocation7], %s873_s22 }
  0x57   : > { %972 = vmatprep.subr.bf16.mxu1 %v1289_v0  ;;  %988 = vmatprep.mubr.msk.bf16.mxu1 %vm1290_vm0, %v1289_v0  ;;  %v1117_v7 = vld [vmem:[#allocation5 + $0x50] sm:$0xff]   ;;  %v1118_v8 = vld [vmem:[#allocation5 + $0x58] sm:$0xff]   ;;  %v1119_v9 = vld [vmem:[#allocation5 + $0x60] sm:$0xff]   ;;  %v1488_v31 = vand.u32 127, %v392_v30  ;;  %s786_s29 = sshll.u32 %s200_s28, 4  ;;  %s1549_s7 = scalar_lea.hbm %s1596_s3, %s922_s27  ;;  %s1551_s29 = int_to_ptr.vmem [resolvable:$true] %s786_s29 }
  0x58   : > { %965 = vmatpush3.bf16.msra.mxu0 %v1113_v1  ;;  %973 = vmatpush3.bf16.msra.mxu1 %v1115_v4  ;;  %v1120_v10 = vld [vmem:[#allocation5 + $0x68] sm:$0xff]   ;;  %v1121_v11 = vld [vmem:[#allocation5 + $0x70] sm:$0xff]   ;;  %v1122_v12 = vld [vmem:[#allocation5 + $0x78] sm:$0xff]   ;;  %s773_s16 = scalar_lea.sflag [#allocation4], %s1448_s30  ;;  %s1213_s18 = scalar_lea.vmem %s1551_s29, 128 }
  0x59   : > { %966 = vmatprep.subr.bf16.mxu0 %v1289_v0  ;;  %974 = vmatprep.subr.bf16.mxu1 %v1289_v0  ;;  %v876_v13 = vld [vmem:[%s1595_s2] ss:$0 sm:$0xff]  ;;  %v881_v21 = vld [vmem:[%s1595_s2 + $0x1] ss:$0 sm:$0xff]  ;;  %vm394_vm2 = vcmp.lt.s32.totalorder %v1488_v31, 20  ;;  %vm395_vm3 = vcmp.ge.s32.totalorder %v1488_v31, 20  ;;  %p1214_p4 = scmp.ne.s32.totalorder %s1551_s29, %s1213_s18 }
  0x5a   : > { %vm396_vm4 = vcmp.lt.s32.totalorder %v1488_v31, 40  ;;  %v1123_v36 = vld [vmem:[#allocation5 + $0x80] sm:$0xff]   ;;  %v1124_v37 = vld [vmem:[#allocation5 + $0x88] sm:$0xff]   ;;  %v1125_v38 = vld [vmem:[#allocation5 + $0x90] sm:$0xff]   ;;  %s1291_s22 = smov [#allocation7]  }
  0x5b   : > { %vm1498_vm5 = vmand %vm395_vm3, %vm396_vm4  ;;  %v1126_v39 = vld [vmem:[#allocation5 + $0x98] sm:$0xff]   ;;  %v1127_v40 = vld [vmem:[#allocation5 + $0xa0] sm:$0xff]   ;;  %p1215_p6 = pnand %p1214_p4, %p1403_p12  ;;  %s1217_s20 = sshll.u32 %s1291_s22, 4  ;;  %s1218_s20 = int_to_ptr.vmem [resolvable:$false] %s1217_s20 }
  0x5c   : > { %967 = vmatpush3.bf16.msra.mxu0 %v1114_v2  ;;  %975 = vmatpush3.bf16.msra.mxu1 %v1116_v6  ;;  %v1128_v41 = vld [vmem:[#allocation5 + $0xa8] sm:$0xff]   ;;  %v1129_v42 = vld [vmem:[#allocation5 + $0xb0] sm:$0xff]   ;;  %v1130_v43 = vld [vmem:[#allocation5 + $0xb8] sm:$0xff]   ;;  %s1219_s4 = scalar_lea.vmem %s1218_s20, 256  ;;  %p1220_p10 = scmp.lt.s32.totalorder %s1551_s29, %s1218_s20 }
  0x5d   : > { %992 = vmatprep.subr.bf16.mxu0 %v1289_v0  ;;  %976 = vmatprep.subr.bf16.mxu1 %v1289_v0  ;;  %v1131_v44 = vld [vmem:[#allocation5 + $0xc0] sm:$0xff]   ;;  %v1132_v45 = vld [vmem:[#allocation5 + $0xc8] sm:$0xff]   ;;  %v1133_v46 = vld [vmem:[#allocation5 + $0xd0] sm:$0xff]   ;;  %p1216_p8 = pneg %p1215_p6  ;;  %p1221_p13 = scmp.lt.s32.totalorder %s1219_s4, %s1213_s18 }
  0x5e   : > { %v1134_v47 = vld [vmem:[#allocation5 + $0xd8] sm:$0xff]   ;;  %v1135_v48 = vld [vmem:[#allocation5 + $0xe0] sm:$0xff]   ;;  %v1136_v49 = vld [vmem:[#allocation5 + $0xe8] sm:$0xff]  }
  0x5f   : > { %969 = vmatmul.mubr.msk.bf16.vlgmr.msra.gmra.mrb[0].mxu0 %vm227_vm1, %v208_v5  ;;  %v912_v34 = vld [vmem:[%s1595_s2 + $0x4] ss:$0 sm:$0xff]  ;;  %p1222_p3 = por %p1221_p13, %p1220_p10 }
  0x60   : > { %1008 = vmatprep.mubr.msk.bf16.mxu0 %vm1290_vm0, %v1289_v0  ;;  %977 = vmatpush3.bf16.msra.mxu1 %v1117_v7 }
  0x61   : > { %978 = vmatprep.subr.bf16.mxu1 %v1289_v0  ;;  %993 = vmatpush3.bf16.msra.mxu0 %v1123_v36  ;;  %p1223_p7 = pnand %p1222_p3, %p1216_p8 }
  0x62   : > { %994 = vmatprep.subr.bf16.mxu0 %v1289_v0 }
  0x64   : > { %979 = vmatpush3.bf16.msra.mxu1 %v1118_v8  ;;  %v1137_v8 = vld [vmem:[#allocation5 + $0xf0] sm:$0xff]  }
  0x65   : > { %980 = vmatprep.subr.bf16.mxu1 %v1289_v0  ;;  %995 = vmatpush3.bf16.msra.mxu0 %v1124_v37 }
  0x66   : > { %996 = vmatprep.subr.bf16.mxu0 %v1289_v0 }
  0x68   : > { %981 = vmatpush3.bf16.msra.mxu1 %v1119_v9  ;;  %v1138_v9 = vld [vmem:[#allocation5 + $0xf8] sm:$0xff]  }
  0x69   : > { %982 = vmatprep.subr.bf16.mxu1 %v1289_v0  ;;  %997 = vmatpush3.bf16.msra.mxu0 %v1125_v38 }
  0x6a   : > { %998 = vmatprep.subr.bf16.mxu0 %v1289_v0 }
  0x6c   : > { %983 = vmatpush3.bf16.msra.mxu1 %v1120_v10  ;;  %v1139_v10 = vld [vmem:[#allocation5 + $0x100] sm:$0xff]  }
  0x6d   : > { %984 = vmatprep.subr.bf16.mxu1 %v1289_v0  ;;  %999 = vmatpush3.bf16.msra.mxu0 %v1126_v39 }
  0x6e   : > { %1000 = vmatprep.subr.bf16.mxu0 %v1289_v0 }
  0x70   : > { %985 = vmatpush3.bf16.msra.mxu1 %v1121_v11  ;;  %v1140_v11 = vld [vmem:[#allocation5 + $0x108] sm:$0xff]  }
  0x71   : > { %986 = vmatprep.subr.bf16.mxu1 %v1289_v0  ;;  %1001 = vmatpush3.bf16.msra.mxu0 %v1127_v40 }
  0x72   : > { %1002 = vmatprep.subr.bf16.mxu0 %v1289_v0 }
  0x74   : > { %987 = vmatpush3.bf16.msra.mxu1 %v1122_v12  ;;  %v1141_v12 = vld [vmem:[#allocation5 + $0x110] sm:$0xff]  }
  0x75   : > { %1012 = vmatprep.subr.bf16.mxu1 %v1289_v0  ;;  %1003 = vmatpush3.bf16.msra.mxu0 %v1128_v41 }
  0x76   : > { %1004 = vmatprep.subr.bf16.mxu0 %v1289_v0 }
  0x79   : > { %1005 = vmatpush3.bf16.msra.mxu0 %v1129_v42 }
  0x7a   : > { %1006 = vmatprep.subr.bf16.mxu0 %v1289_v0 }
  0x7d   : > { %1007 = vmatpush3.bf16.msra.mxu0 %v1130_v43 }
  0x7e   : > { %1032 = vmatprep.subr.bf16.mxu0 %v1289_v0 }
 0x132   : > { %v265_v14 = vpop.f32.mrb[0].mxu0 }
 0x133   : > { %v266_v15 = vadd.f32 %v876_v13, %v265_v14  ;;  %v970_v16 = vpop.f32.mrb[1].mxu0  ;;  %v1142_v13 = vld [vmem:[#allocation5 + $0x118] sm:$0xff]   ;;  %v1143_v14 = vld [vmem:[#allocation5 + $0x120] sm:$0xff]  }
 0x134   : > { %v268_v17 = vpop.f32.mrb[2].mxu0  ;;  %v892_v16 = vld [vmem:[%s1595_s2 + $0x2] ss:$0 sm:$0xff] }
 0x135   : > { %v271_v18 = vmax.f32 %v266_v15, 0.0  ;;  %v971_v19 = vpop.f32.mrb[3].mxu0  ;;  %v1144_v15 = vld [vmem:[#allocation5 + $0x128] sm:$0xff]  }
 0x137   : > { %v291_v20 = vpack.c.bf16 %v271_v18, %v271_v18 }
 0x139   : > { %989 = vmatmul.mubr.bf16.vlgmr.msra.gmra.mrb[0].mxu1 %v291_v20 }
 0x13a   : > { %1028 = vmatprep.mubr.msk.bf16.mxu1 %vm1290_vm0, %v1289_v0  ;;  %1013 = vmatpush3.bf16.msra.mxu1 %v1131_v44 }
 0x13b   : > { %1014 = vmatprep.subr.bf16.mxu1 %v1289_v0 }
 0x13e   : > { %1015 = vmatpush3.bf16.msra.mxu1 %v1132_v45 }
 0x13f   : > { %1016 = vmatprep.subr.bf16.mxu1 %v1289_v0 }
 0x142   : > { %1017 = vmatpush3.bf16.msra.mxu1 %v1133_v46 }
 0x143   : > { %1018 = vmatprep.subr.bf16.mxu1 %v1289_v0 }
 0x146   : > { %1019 = vmatpush3.bf16.msra.mxu1 %v1134_v47 }
 0x147   : > { %1020 = vmatprep.subr.bf16.mxu1 %v1289_v0 }
 0x14a   : > { %1021 = vmatpush3.bf16.msra.mxu1 %v1135_v48 }
 0x14b   : > { %1022 = vmatprep.subr.bf16.mxu1 %v1289_v0 }
 0x14e   : > { %1023 = vmatpush3.bf16.msra.mxu1 %v1136_v49 }
 0x14f   : > { %1024 = vmatprep.subr.bf16.mxu1 %v1289_v0 }
 0x152   : > { %1025 = vmatpush3.bf16.msra.mxu1 %v1137_v8 }
 0x153   : > { %1026 = vmatprep.subr.bf16.mxu1 %v1289_v0 }
 0x156   : > { %1027 = vmatpush3.bf16.msra.mxu1 %v1138_v9 }
 0x20c   : > { %v380_v22 = vpop.f32.mrb[0].mxu1 }
 0x20d   : > { %v381_v23 = vadd.f32 %v881_v21, %v380_v22  ;;  %v990_v24 = vpop.f32.mrb[1].mxu1 }
 0x20e   : > { %v383_v25 = vpop.f32.mrb[2].mxu1  ;;  %v1145_v24 = vld [vmem:[#allocation5 + $0x130] sm:$0xff]  }
 0x20f   : > { %v890_v26 = vmul.f32 -1.442695, %v381_v23  ;;  %v991_v27 = vpop.f32.mrb[3].mxu1  ;;  %v1146_v25 = vld [vmem:[#allocation5 + $0x138] sm:$0xff]  }
 0x211   : > { %1147 = vpow2.f32 %v890_v26  ;;  %v902_v26 = vld [vmem:[%s1595_s2 + $0x3] ss:$0 sm:$0xff] }
 0x21b   : > { %v1148_v28 = vpop.eup %1147 }
 0x21c   : > { %v389_v29 = vadd.f32 1.0, %v1148_v28 }
 0x21e   : > { %1149 = vrcp.f32 %v389_v29 }
 0x228   : > { %v1493_v32 = vpop.eup %1149 }
 0x229   : > { %v400_v33 = vsel %vm394_vm2, %v1493_v32, 0.0  ;;  %v405_v35 = vsel %vm1498_vm5, %v1493_v32, 0.0 }
 0x22a   : > { %401 = vadd.xlane.f32.xlu0 %v400_v33 }
 0x22e   : > { %406 = vadd.xlane.f32.xlu0 %v405_v35 }
 0x2b7   : > { %v402_v50 = vpop.xlane.xlu0 %401 }
 0x2b8   : > { %1151 = vrcp.f32 %v402_v50 }
 0x2bb   : > { %v407_v51 = vpop.xlane.xlu0 %406 }
 0x2bc   : > { %1153 = vrcp.f32 %v407_v51 }
 0x2c2   : > { %v1152_v52 = vpop.eup %1151 }
 0x2c3   : > { %v409_v53 = vmul.f32 %v1152_v52, %v402_v50 }
 0x2c5   : > { %v410_v54 = vsub.f32 2.0, %v409_v53 }
 0x2c6   : > { %v1154_v55 = vpop.eup %1153 }
 0x2c7   : > { %v411_v56 = vmul.f32 %v1152_v52, %v410_v54  ;;  %v417_v57 = vmul.f32 %v1154_v55, %v407_v51 }
 0x2c9   : > { %v412_v58 = vmul.f32 %v411_v56, %v402_v50  ;;  %v418_v59 = vsub.f32 2.0, %v417_v57 }
 0x2cb   : > { %v413_v60 = vsub.f32 2.0, %v412_v58  ;;  %v419_v61 = vmul.f32 %v1154_v55, %v418_v59 }
 0x2cd   : > { %v420_v62 = vmul.f32 %v419_v61, %v407_v51  ;;  %v414_v63 = vmul.f32 %v413_v60, %v411_v56 }
 0x2cf   : > { %v421_v1 = vsub.f32 2.0, %v420_v62  ;;  %v415_v3 = vsel %vm394_vm2, %v414_v63, 0.0 }
 0x2d1   : > { %v422_v2 = vmul.f32 %v421_v1, %v419_v61 }
 0x2d3   : > { %v423_v4 = vsel %vm1498_vm5, %v422_v2, 0.0 }
 0x2d4   : > { %v424_v5 = vadd.f32 %v423_v4, %v415_v3 }
 0x2d6   : > { %v425_v6 = vmul.f32 %v1493_v32, %v424_v5 }
 0x2d8   : > { %v445_v7 = vpack.c.bf16 %v425_v6, %v425_v6 }
 0x2da   : > { %1009 = vmatmul.mubr.bf16.vlgmr.msra.gmra.mrb[4].mxu0 %v445_v7 }
 0x2db   : > { %1048 = vmatprep.mubr.msk.bf16.mxu0 %vm1290_vm0, %v1289_v0  ;;  %1033 = vmatpush3.bf16.msra.mxu0 %v1139_v10 }
 0x2dc   : > { %1034 = vmatprep.subr.bf16.mxu0 %v1289_v0 }
 0x2df   : > { %1035 = vmatpush3.bf16.msra.mxu0 %v1140_v11 }
 0x2e0   : > { %1036 = vmatprep.subr.bf16.mxu0 %v1289_v0 }
 0x2e3   : > { %1037 = vmatpush3.bf16.msra.mxu0 %v1141_v12 }
 0x2e4   : > { %1038 = vmatprep.subr.bf16.mxu0 %v1289_v0 }
 0x2e7   : > { %1039 = vmatpush3.bf16.msra.mxu0 %v1142_v13 }
 0x2e8   : > { %1040 = vmatprep.subr.bf16.mxu0 %v1289_v0 }
 0x2eb   : > { %1041 = vmatpush3.bf16.msra.mxu0 %v1143_v14 }
 0x2ec   : > { %1042 = vmatprep.subr.bf16.mxu0 %v1289_v0 }
 0x2ef   : > { %1043 = vmatpush3.bf16.msra.mxu0 %v1144_v15 }
 0x2f0   : > { %1044 = vmatprep.subr.bf16.mxu0 %v1289_v0 }
 0x2f3   : > { %1045 = vmatpush3.bf16.msra.mxu0 %v1145_v24 }
 0x2f4   : > { %1046 = vmatprep.subr.bf16.mxu0 %v1289_v0 }
 0x2f7   : > { %1047 = vmatpush3.bf16.msra.mxu0 %v1146_v25 }
 0x3ad   : > { %v534_v17 = vpop.f32.mrb[4].mxu0 }
 0x3ae   : > { %v535_v18 = vadd.f32 %v892_v16, %v534_v17  ;;  %v1010_v19 = vpop.f32.mrb[5].mxu0 }
 0x3af   : > { %v537_v20 = vpop.f32.mrb[6].mxu0 }
 0x3b0   : > { %v540_v21 = vmax.f32 %v535_v18, 0.0  ;;  %v1011_v22 = vpop.f32.mrb[7].mxu0 }
 0x3b2   : > { %v560_v23 = vpack.c.bf16 %v540_v21, %v540_v21 }
 0x3b4   : > { %1029 = vmatmul.mubr.bf16.vlgmr.msra.gmra.mrb[4].mxu1 %v560_v23 }
 0x487   : > { %v649_v27 = vpop.f32.mrb[4].mxu1 }
 0x488   : > { %v650_v28 = vadd.f32 %v902_v26, %v649_v27  ;;  %v1030_v29 = vpop.f32.mrb[5].mxu1 }
 0x489   : > { %v652_v30 = vpop.f32.mrb[6].mxu1 }
 0x48a   : > { %v655_v31 = vmax.f32 %v650_v28, 0.0  ;;  %v1031_v32 = vpop.f32.mrb[7].mxu1 }
 0x48c   : > { %v675_v33 = vpack.c.bf16 %v655_v31, %v655_v31 }
 0x48e   : > { %1049 = vmatmul.mubr.bf16.vlgmr.msra.gmra.mrb[8].mxu0 %v675_v33 }
 0x561   : > { %v764_v0 = vpop.f32.mrb[8].mxu0 }
 0x562   : > { %v765_v35 = vadd.f32 %v912_v34, %v764_v0  ;;  %v1050_v36 = vpop.f32.mrb[9].mxu0 }
 0x563   : > { %v767_v37 = vpop.f32.mrb[10].mxu0 }
 0x564   : > { %v770_v38 = vadd.f32 %v765_v35, %v425_v6  ;;  %v1051_v39 = vpop.f32.mrb[11].mxu0 }
 0x566   : > { %771 = vst [vmem:[%s200_s28] sm:$0xff] %v770_v38 }
 0x567   : > { %1226 = shalt.err (!%p1223_p7)
}
 0x568   : > { %s1227_s30 = scalar_lea.hbm %s1549_s7, 128  ;;  %s1231_s5 = scalar_lea.hbm %s1596_s3, 256 }
 0x569   : > { %p1228_p9 = scmp.ne.s32.totalorder %s1549_s7, %s1227_s30  ;;  %p1232_p0 = scmp.lt.u32.totalorder %s1549_s7, %s1596_s3 }
 0x56a   : > { %p1233_p11 = scmp.lt.u32.totalorder %s1231_s5, %s1227_s30  ;;  %p1235_p4 = scmp.lt.u32.totalorder %s1227_s30, %s1549_s7 }
 0x56b   : > { %p1229_p2 = pnand %p1228_p9, %p1403_p12 }
 0x56c   : > { %p1234_p1 = por %p1233_p11, %p1232_p0 }
 0x56d   : > { %p1230_p5 = pneg %p1229_p2 }
 0x56e   : > { %p1236_p6 = por %p1235_p4, %p1234_p1 }
 0x570   : > { %p1237_p8 = pnand %p1236_p6, %p1230_p5 }
 0x572   : > { %1240 = shalt.err (!%p1237_p8)
}
 0x573   : > { %1058 = dma.vmem_to_hbm [thread:$0]  (%p1403_p12), %s1551_s29, 128, %s1549_s7, %s773_s16  }
 0x574 PF: > { %s798_s10 = sand.u32 1, %s1271_s12   ;;  %p1613_p10 = scmp.ne.s32.totalorder %s1601_s19, 0 }
 0x575   : > { %p1614_p13 = scmp.ge.s32.totalorder %s1283_s15, 2  ;;  %s799_s11 = scalar_lea.sflag [#allocation4], %s798_s10 }
 0x577   : > { %p1069_p3 = pnand %p1614_p13, %p1613_p10 }
 0x579   : > { %1266 = dma.done.wait (!%p1069_p3), %s799_s11, 128  }
 0x57a   : > { %1268 = vsyncadd (!%p1069_p3), %s799_s11, 4294967168  ;;  %p17_p7 = scmp.ge.s32.totalorder %s1368_s24, 4   ;;  %s1615_s12 = smov %s1275_s13 }
 0x57b   : > { %s1616_s13 = smov %s1279_s14  ;;  %s1617_s14 = smov %s1399_s17 }
 0x57c   : > { %s1618_s15 = smov %s1368_s24  ;;  %19 = sbr.rel (!%p17_p7) target bundleno = 6 (0x6), region = 89 }
 0x583   :  { %804 = vsyncpa [#allocation3], 1 }
 0x584   :  { %806 = vsyncpa [#allocation3 + $0x1], 1 }
 0x585   :  { %807 = vsyncpa [#allocation6], 1 }
 0x586   :  { %808 = vsyncpa [#allocation4], 1 }
 0x587   :  { %810 = vsyncpa [#allocation4 + $0x1], 1 }

// kernel: tpu_custom_call.1
= control target key start
LH: loop header
LB: loop body
LE: loop exit
PB: predicated region body
PF: predicated region fallthrough
CT: control target
= control target key end

     0   :  { %8 = vsyncpa [#allocation3], 0  ;;  %s1593_s0 = inlined_call_operand.hbm [shape: f32[16,32], index: 0, kind: input, shape index: {}]   ;;  %s1594_s1 = inlined_call_operand.hbm [shape: bf16[5,128,128], index: 1, kind: input, shape index: {}]   ;;  %s1595_s2 = inlined_call_operand.vmem [shape: f32[5,1,128], index: 2, kind: input, shape index: {}]   ;;  %s1596_s3 = inlined_call_operand.hbm [shape: f32[16,128], index: 3, kind: output, shape index: {}]  }
   0x1   :  { %10 = vsyncpa [#allocation3 + $0x1], 0 }
   0x2   :  { %11 = vsyncpa [#allocation6], 0 }
   0x3   :  { %12 = vsyncpa [#allocation4], 0 }
   0x4   :  { %14 = vsyncpa [#allocation4 + $0x1], 0  ;;  %s1312_s12 = smov 0   ;;  %s1314_s13 = smov 0  }
   0x5   :  { %s1316_s14 = smov 0   ;;  %s1318_s15 = smov 0  }
   0x6 LB: > { %s1333_s16 = sadd.s32 4294967295, %s1283_s15   ;;  %s866_s17 = sadd.s32 4294967294, %s1283_s15   ;;  %s1283_s15 = sphi %s1318_s15, %s1618_s15   ;;  %s1279_s14 = sphi %s1316_s14, %s1617_s14   ;;  %s1275_s13 = sphi %s1314_s13, %s1616_s13   ;;  %s1271_s12 = sphi %s1312_s12, %s1615_s12  }
   0x7   : > { %p40_p0 = scmp.ne.s32.totalorder %s1275_s13, %s1271_s12  ;;  %p1597_p1 = scmp.eq.s32.totalorder %s1333_s16, 0 }
   0x8   : > { %p112_p3 = scmp.eq.s32.totalorder %s866_s17, 1  ;;  %p867_p5 = scmp.ge.s32.totalorder %s1283_s15, 1 }
   0x9   : > { %p1342_p4 = por %p1597_p1, %p40_p0  ;;  %p119_p7 = scmp.lt.s32.totalorder %s1283_s15, 3 }
   0xa   : > { %p1347_p6 = por %p112_p3, %p40_p0  ;;  %s1285_s21 = smov [#allocation5]  }
   0xb   : > { %s1600_s18 = scalar_select %p1342_p4, 1, 0 }
   0xc   : > { %s1601_s19 = scalar_select %p1347_p6, 1, 0 }
   0xd   : > { %p1352_p8 = pnand %p867_p5, %p119_p7  ;;  %s131_s22 = sshll.u32 %s1285_s21, 4  ;;  %s1356_s22 = int_to_ptr.vmem [resolvable:$true] %s131_s22 }
   0xe   : > { %s1368_s24 = sadd.s32 1, %s1283_s15   ;;  %s27_s25 = sadd.s32 1, %s1279_s14 }
   0xf   : > { %s1602_s20 = scalar_select %p1352_p8, 1, 0 }
  0x10   : > { %p1060_p9 = pneg %p1352_p8  ;;  %s24_s26 = ssub.s32 %s1283_s15, %s1368_s24 }
  0x11   : > { %s1155_s29 = scalar_lea.hbm %s1594_s1, 5120 }
  0x12   : > { %p1363_p11 = pnand %p1060_p9, %p1597_p1  ;;  %p1156_p12 = scmp.ne.s32.totalorder %s1594_s1, %s1155_s29 }
  0x13   : > { %p1162_p5 = scmp.lt.u32.totalorder %s1155_s29, %s1594_s1 }
  0x14   : > { %p1157_p13 = pneg %p1363_p11 }
  0x16   : > { %p1158_p0 = pnand %p1157_p13, %p1156_p12 }
  0x18   : > { %p1159_p3 = pneg %p1158_p0 }
  0x1a   : > { %p1164_p7 = pnand %p1162_p5, %p1159_p3 }
  0x1c   : > { %1167 = shalt.err (!%p1164_p7)
}
  0x1d   : > { %s1168_s7 = scalar_lea.vmem %s1356_s22, 5120  ;;  %p1176_p2 = scmp.lt.s32.totalorder %s1356_s22, %s1356_s22 }
  0x1e   : > { %p1169_p9 = scmp.ne.s32.totalorder %s1356_s22, %s1168_s7  ;;  %p1177_p6 = scmp.lt.s32.totalorder %s1168_s7, %s1168_s7 }
  0x20   : > { %p1171_p10 = pnand %p1169_p9, %p1157_p13  ;;  %p1178_p4 = por %p1177_p6, %p1176_p2 }
  0x22   : > { %p1172_p1 = pneg %p1171_p10 }
  0x24   : > { %p1179_p8 = pnand %p1178_p4, %p1172_p1 }
  0x26   : > { %1182 = shalt.err (!%p1179_p8)
}
  0x27   : > { %s1286_s8 = smov 64   ;;  %s1287_s9 = smov 4  }
  0x28   : > { %1063 = dma.hbm_to_vmem [thread:$0]  (!%p1363_p11), %s1594_s1, 5120, %s1356_s22, [#allocation6], %s1286_s8, %s1286_s8, %s1287_s9  }
  0x29   : > { %p25_p2 = scmp.eq.s32.totalorder %s24_s26, 0  ;;  %p34_p1 = scmp.ne.s32.totalorder %s1279_s14, %s1275_s13 }
  0x2a   : > { %p35_p4 = scmp.eq.s32.totalorder %s1283_s15, 0  ;;  %p1073_p6 = scmp.lt.s32.totalorder %s1283_s15, 2 }
  0x2b   : > { %s1399_s17 = scalar_select %p25_p2, %s1279_s14, %s27_s25  }
  0x2c   : > { %p36_p8 = por %p35_p4, %p34_p1  ;;  %p1604_p10 = scmp.eq.s32.totalorder %s1333_s16, 1 }
  0x2d   : > { %s148_s27 = sand.u32 1, %s1279_s14   ;;  %s871_s28 = sshll.u32 %s1283_s15, 7 }
  0x2e   : > { %p1403_p12 = por %p1604_p10, %p34_p1  ;;  %s870_s29 = sshll.u32 %s148_s27, 3 }
  0x2f   : > { %s1412_s4 = scalar_lea.hbm %s1593_s0, %s871_s28  ;;  %s152_s22 = scalar_lea.vmem [#allocation2], %s870_s29 }
  0x30   : > { %s159_s25 = sshll.u32 %s152_s22, 4  ;;  %p1414_p11 = pnand %p1073_p6, %p36_p8  ;;  %s1418_s25 = int_to_ptr.vmem [resolvable:$true] %s159_s25 }
  0x31   : > { %s149_s5 = scalar_lea.sflag [#allocation3], %s148_s27  ;;  %s1183_s6 = scalar_lea.hbm %s1412_s4, 128 }
  0x32   : > { %p1184_p13 = scmp.ne.s32.totalorder %s1412_s4, %s1183_s6  ;;  %p1185_p0 = pneg %p1414_p11 }
  0x33   : > { %s1188_s9 = scalar_lea.hbm %s1593_s0, 256  ;;  %p1189_p7 = scmp.lt.u32.totalorder %s1412_s4, %s1593_s0 }
  0x34   : > { %p1186_p3 = pnand %p1185_p0, %p1184_p13  ;;  %p1190_p9 = scmp.lt.u32.totalorder %s1188_s9, %s1183_s6 }
  0x35   : > { %p1192_p1 = scmp.lt.u32.totalorder %s1183_s6, %s1412_s4 }
  0x36   : > { %p1187_p5 = pneg %p1186_p3  ;;  %p1191_p2 = por %p1190_p9, %p1189_p7 }
  0x38   : > { %p1193_p4 = por %p1192_p1, %p1191_p2 }
  0x3a   : > { %p1194_p6 = pnand %p1193_p4, %p1187_p5 }
  0x3c   : > { %1197 = shalt.err (!%p1194_p6)
}
  0x3d   : > { %s1198_s27 = scalar_lea.vmem %s1418_s25, 128  ;;  %s1288_s28 = smov [#allocation2]  }
  0x3e   : > { %p1199_p8 = scmp.ne.s32.totalorder %s1418_s25, %s1198_s27  ;;  %s1203_s29 = sshll.u32 %s1288_s28, 4  ;;  %s1204_s29 = int_to_ptr.vmem [resolvable:$false] %s1203_s29 }
  0x3f   : > { %s1205_s23 = scalar_lea.vmem %s1204_s29, 256  ;;  %p1206_p3 = scmp.lt.s32.totalorder %s1418_s25, %s1204_s29 }
  0x40   : > { %p1201_p10 = pnand %p1199_p8, %p1185_p0  ;;  %p1207_p7 = scmp.lt.s32.totalorder %s1205_s23, %s1198_s27 }
  0x42   : > { %p1202_p13 = pneg %p1201_p10  ;;  %p1208_p9 = por %p1207_p7, %p1206_p3 }
  0x44   : > { %p1209_p2 = pnand %p1208_p9, %p1202_p13 }
  0x46   : > { %1212 = shalt.err (!%p1209_p2)
}
  0x47   : > { %1067 = dma.hbm_to_vmem [thread:$0]  (!%p1414_p11), %s1412_s4, 128, %s1418_s25, %s149_s5  }
  0x48   : > { %p1607_p5 = scmp.ne.s32.totalorder %s1602_s20, 0 }
  0x49   : > { %s1448_s30 = sand.u32 (!%p1607_p5), 1, %s1275_s13   ;;  %p1608_p0 = scmp.ne.s32.totalorder (!%p1607_p5), %s1600_s18, 0 }
  0x4a   : > { %168 = sbr.rel (%p1607_p5) target bundleno = 1396 (0x574), region = 32  ;;  %s873_s22 = sshll.u32 (!%p1607_p5), %s1448_s30, 3 }
  0x4b   : > { %s171_s6 = scalar_lea.sflag (!%p1607_p5), [#allocation3], %s1448_s30  ;;  %s174_s7 = scalar_lea.vmem (!%p1607_p5), [#allocation2], %s873_s22 }
  0x51   : > { %1258 = dma.done.wait (%p1608_p0), %s171_s6, 128  }
  0x52   : > { %1260 = vsyncadd (%p1608_p0), %s171_s6, 4294967168  ;;  %p1609_p11 = scmp.eq.s32.totalorder %s1333_s16, 0 }
  0x54   : > { %1262 = dma.done.wait (%p1609_p11), [#allocation6], 5120   ;;  %p1610_p1 = pmov %p1609_p11 }
  0x55   : > { %v1289_v0 = vmov 0.0   ;;  %vm1290_vm0 = vmmov 0   ;;  %v1113_v1 = vld [vmem:[#allocation5] sm:$0xff]   ;;  %v1114_v2 = vld [vmem:[#allocation5 + $0x8] sm:$0xff]   ;;  %v202_v3 = vld [vmem:[%s174_s7] sm:$0xff]  ;;  %vm227_vm1 = vcmask 261120   ;;  %v392_v30 = vlaneseq }
  0x56   : > { %1264 = vsyncadd (%p1610_p1), [#allocation6], 4294962176  ;;  %964 = vmatprep.subr.bf16.mxu0 %v1289_v0  ;;  %968 = vmatprep.mubr.msk.bf16.mxu0 %vm1290_vm0, %v1289_v0  ;;  %v1115_v4 = vld [vmem:[#allocation5 + $0x40] sm:$0xff]   ;;  %v208_v5 = vpack.c.bf16 %v202_v3, %v202_v3  ;;  %v1116_v6 = vld [vmem:[#allocation5 + $0x48] sm:$0xff]   ;;  %s922_s27 = sshll.u32 %s1333_s16, 7  ;;  %s200_s28 = scalar_lea.vmem [#allocation7], %s873_s22 }
  0x57   : > { %972 = vmatprep.subr.bf16.mxu1 %v1289_v0  ;;  %988 = vmatprep.mubr.msk.bf16.mxu1 %vm1290_vm0, %v1289_v0  ;;  %v1117_v7 = vld [vmem:[#allocation5 + $0x50] sm:$0xff]   ;;  %v1118_v8 = vld [vmem:[#allocation5 + $0x58] sm:$0xff]   ;;  %v1119_v9 = vld [vmem:[#allocation5 + $0x60] sm:$0xff]   ;;  %v1488_v31 = vand.u32 127, %v392_v30  ;;  %s786_s29 = sshll.u32 %s200_s28, 4  ;;  %s1549_s7 = scalar_lea.hbm %s1596_s3, %s922_s27  ;;  %s1551_s29 = int_to_ptr.vmem [resolvable:$true] %s786_s29 }
  0x58   : > { %965 = vmatpush3.bf16.msra.mxu0 %v1113_v1  ;;  %973 = vmatpush3.bf16.msra.mxu1 %v1115_v4  ;;  %v1120_v10 = vld [vmem:[#allocation5 + $0x68] sm:$0xff]   ;;  %v1121_v11 = vld [vmem:[#allocation5 + $0x70] sm:$0xff]   ;;  %v1122_v12 = vld [vmem:[#allocation5 + $0x78] sm:$0xff]   ;;  %s773_s16 = scalar_lea.sflag [#allocation4], %s1448_s30  ;;  %s1213_s18 = scalar_lea.vmem %s1551_s29, 128 }
  0x59   : > { %966 = vmatprep.subr.bf16.mxu0 %v1289_v0  ;;  %974 = vmatprep.subr.bf16.mxu1 %v1289_v0  ;;  %v876_v13 = vld [vmem:[%s1595_s2] ss:$0 sm:$0xff]  ;;  %v881_v21 = vld [vmem:[%s1595_s2 + $0x1] ss:$0 sm:$0xff]  ;;  %vm394_vm2 = vcmp.lt.s32.totalorder %v1488_v31, 20  ;;  %vm395_vm3 = vcmp.ge.s32.totalorder %v1488_v31, 20  ;;  %p1214_p4 = scmp.ne.s32.totalorder %s1551_s29, %s1213_s18 }
  0x5a   : > { %vm396_vm4 = vcmp.lt.s32.totalorder %v1488_v31, 40  ;;  %v1123_v36 = vld [vmem:[#allocation5 + $0x80] sm:$0xff]   ;;  %v1124_v37 = vld [vmem:[#allocation5 + $0x88] sm:$0xff]   ;;  %v1125_v38 = vld [vmem:[#allocation5 + $0x90] sm:$0xff]   ;;  %s1291_s22 = smov [#allocation7]  }
  0x5b   : > { %vm1498_vm5 = vmand %vm395_vm3, %vm396_vm4  ;;  %v1126_v39 = vld [vmem:[#allocation5 + $0x98] sm:$0xff]   ;;  %v1127_v40 = vld [vmem:[#allocation5 + $0xa0] sm:$0xff]   ;;  %p1215_p6 = pnand %p1214_p4, %p1403_p12  ;;  %s1217_s20 = sshll.u32 %s1291_s22, 4  ;;  %s1218_s20 = int_to_ptr.vmem [resolvable:$false] %s1217_s20 }
  0x5c   : > { %967 = vmatpush3.bf16.msra.mxu0 %v1114_v2  ;;  %975 = vmatpush3.bf16.msra.mxu1 %v1116_v6  ;;  %v1128_v41 = vld [vmem:[#allocation5 + $0xa8] sm:$0xff]   ;;  %v1129_v42 = vld [vmem:[#allocation5 + $0xb0] sm:$0xff]   ;;  %v1130_v43 = vld [vmem:[#allocation5 + $0xb8] sm:$0xff]   ;;  %s1219_s4 = scalar_lea.vmem %s1218_s20, 256  ;;  %p1220_p10 = scmp.lt.s32.totalorder %s1551_s29, %s1218_s20 }
  0x5d   : > { %992 = vmatprep.subr.bf16.mxu0 %v1289_v0  ;;  %976 = vmatprep.subr.bf16.mxu1 %v1289_v0  ;;  %v1131_v44 = vld [vmem:[#allocation5 + $0xc0] sm:$0xff]   ;;  %v1132_v45 = vld [vmem:[#allocation5 + $0xc8] sm:$0xff]   ;;  %v1133_v46 = vld [vmem:[#allocation5 + $0xd0] sm:$0xff]   ;;  %p1216_p8 = pneg %p1215_p6  ;;  %p1221_p13 = scmp.lt.s32.totalorder %s1219_s4, %s1213_s18 }
  0x5e   : > { %v1134_v47 = vld [vmem:[#allocation5 + $0xd8] sm:$0xff]   ;;  %v1135_v48 = vld [vmem:[#allocation5 + $0xe0] sm:$0xff]   ;;  %v1136_v49 = vld [vmem:[#allocation5 + $0xe8] sm:$0xff]  }
  0x5f   : > { %969 = vmatmul.mubr.msk.bf16.vlgmr.msra.gmra.mrb[0].mxu0 %vm227_vm1, %v208_v5  ;;  %v912_v34 = vld [vmem:[%s1595_s2 + $0x4] ss:$0 sm:$0xff]  ;;  %p1222_p3 = por %p1221_p13, %p1220_p10 }
  0x60   : > { %1008 = vmatprep.mubr.msk.bf16.mxu0 %vm1290_vm0, %v1289_v0  ;;  %977 = vmatpush3.bf16.msra.mxu1 %v1117_v7 }
  0x61   : > { %978 = vmatprep.subr.bf16.mxu1 %v1289_v0  ;;  %993 = vmatpush3.bf16.msra.mxu0 %v1123_v36  ;;  %p1223_p7 = pnand %p1222_p3, %p1216_p8 }
  0x62   : > { %994 = vmatprep.subr.bf16.mxu0 %v1289_v0 }
  0x64   : > { %979 = vmatpush3.bf16.msra.mxu1 %v1118_v8  ;;  %v1137_v8 = vld [vmem:[#allocation5 + $0xf0] sm:$0xff]  }
  0x65   : > { %980 = vmatprep.subr.bf16.mxu1 %v1289_v0  ;;  %995 = vmatpush3.bf16.msra.mxu0 %v1124_v37 }
  0x66   : > { %996 = vmatprep.subr.bf16.mxu0 %v1289_v0 }
  0x68   : > { %981 = vmatpush3.bf16.msra.mxu1 %v1119_v9  ;;  %v1138_v9 = vld [vmem:[#allocation5 + $0xf8] sm:$0xff]  }
  0x69   : > { %982 = vmatprep.subr.bf16.mxu1 %v1289_v0  ;;  %997 = vmatpush3.bf16.msra.mxu0 %v1125_v38 }
  0x6a   : > { %998 = vmatprep.subr.bf16.mxu0 %v1289_v0 }
  0x6c   : > { %983 = vmatpush3.bf16.msra.mxu1 %v1120_v10  ;;  %v1139_v10 = vld [vmem:[#allocation5 + $0x100] sm:$0xff]  }
  0x6d   : > { %984 = vmatprep.subr.bf16.mxu1 %v1289_v0  ;;  %999 = vmatpush3.bf16.msra.mxu0 %v1126_v39 }
  0x6e   : > { %1000 = vmatprep.subr.bf16.mxu0 %v1289_v0 }
  0x70   : > { %985 = vmatpush3.bf16.msra.mxu1 %v1121_v11  ;;  %v1140_v11 = vld [vmem:[#allocation5 + $0x108] sm:$0xff]  }
  0x71   : > { %986 = vmatprep.subr.bf16.mxu1 %v1289_v0  ;;  %1001 = vmatpush3.bf16.msra.mxu0 %v1127_v40 }
  0x72   : > { %1002 = vmatprep.subr.bf16.mxu0 %v1289_v0 }
  0x74   : > { %987 = vmatpush3.bf16.msra.mxu1 %v1122_v12  ;;  %v1141_v12 = vld [vmem:[#allocation5 + $0x110] sm:$0xff]  }
  0x75   : > { %1012 = vmatprep.subr.bf16.mxu1 %v1289_v0  ;;  %1003 = vmatpush3.bf16.msra.mxu0 %v1128_v41 }
  0x76   : > { %1004 = vmatprep.subr.bf16.mxu0 %v1289_v0 }
  0x79   : > { %1005 = vmatpush3.bf16.msra.mxu0 %v1129_v42 }
  0x7a   : > { %1006 = vmatprep.subr.bf16.mxu0 %v1289_v0 }
  0x7d   : > { %1007 = vmatpush3.bf16.msra.mxu0 %v1130_v43 }
  0x7e   : > { %1032 = vmatprep.subr.bf16.mxu0 %v1289_v0 }
 0x132   : > { %v265_v14 = vpop.f32.mrb[0].mxu0 }
 0x133   : > { %v266_v15 = vadd.f32 %v876_v13, %v265_v14  ;;  %v970_v16 = vpop.f32.mrb[1].mxu0  ;;  %v1142_v13 = vld [vmem:[#allocation5 + $0x118] sm:$0xff]   ;;  %v1143_v14 = vld [vmem:[#allocation5 + $0x120] sm:$0xff]  }
 0x134   : > { %v268_v17 = vpop.f32.mrb[2].mxu0  ;;  %v892_v16 = vld [vmem:[%s1595_s2 + $0x2] ss:$0 sm:$0xff] }
 0x135   : > { %v271_v18 = vmax.f32 %v266_v15, 0.0  ;;  %v971_v19 = vpop.f32.mrb[3].mxu0  ;;  %v1144_v15 = vld [vmem:[#allocation5 + $0x128] sm:$0xff]  }
 0x137   : > { %v291_v20 = vpack.c.bf16 %v271_v18, %v271_v18 }
 0x139   : > { %989 = vmatmul.mubr.bf16.vlgmr.msra.gmra.mrb[0].mxu1 %v291_v20 }
 0x13a   : > { %1028 = vmatprep.mubr.msk.bf16.mxu1 %vm1290_vm0, %v1289_v0  ;;  %1013 = vmatpush3.bf16.msra.mxu1 %v1131_v44 }
 0x13b   : > { %1014 = vmatprep.subr.bf16.mxu1 %v1289_v0 }
 0x13e   : > { %1015 = vmatpush3.bf16.msra.mxu1 %v1132_v45 }
 0x13f   : > { %1016 = vmatprep.subr.bf16.mxu1 %v1289_v0 }
 0x142   : > { %1017 = vmatpush3.bf16.msra.mxu1 %v1133_v46 }
 0x143   : > { %1018 = vmatprep.subr.bf16.mxu1 %v1289_v0 }
 0x146   : > { %1019 = vmatpush3.bf16.msra.mxu1 %v1134_v47 }
 0x147   : > { %1020 = vmatprep.subr.bf16.mxu1 %v1289_v0 }
 0x14a   : > { %1021 = vmatpush3.bf16.msra.mxu1 %v1135_v48 }
 0x14b   : > { %1022 = vmatprep.subr.bf16.mxu1 %v1289_v0 }
 0x14e   : > { %1023 = vmatpush3.bf16.msra.mxu1 %v1136_v49 }
 0x14f   : > { %1024 = vmatprep.subr.bf16.mxu1 %v1289_v0 }
 0x152   : > { %1025 = vmatpush3.bf16.msra.mxu1 %v1137_v8 }
 0x153   : > { %1026 = vmatprep.subr.bf16.mxu1 %v1289_v0 }
 0x156   : > { %1027 = vmatpush3.bf16.msra.mxu1 %v1138_v9 }
 0x20c   : > { %v380_v22 = vpop.f32.mrb[0].mxu1 }
 0x20d   : > { %v381_v23 = vadd.f32 %v881_v21, %v380_v22  ;;  %v990_v24 = vpop.f32.mrb[1].mxu1 }
 0x20e   : > { %v383_v25 = vpop.f32.mrb[2].mxu1  ;;  %v1145_v24 = vld [vmem:[#allocation5 + $0x130] sm:$0xff]  }
 0x20f   : > { %v890_v26 = vmul.f32 -1.442695, %v381_v23  ;;  %v991_v27 = vpop.f32.mrb[3].mxu1  ;;  %v1146_v25 = vld [vmem:[#allocation5 + $0x138] sm:$0xff]  }
 0x211   : > { %1147 = vpow2.f32 %v890_v26  ;;  %v902_v26 = vld [vmem:[%s1595_s2 + $0x3] ss:$0 sm:$0xff] }
 0x21b   : > { %v1148_v28 = vpop.eup %1147 }
 0x21c   : > { %v389_v29 = vadd.f32 1.0, %v1148_v28 }
 0x21e   : > { %1149 = vrcp.f32 %v389_v29 }
 0x228   : > { %v1493_v32 = vpop.eup %1149 }
 0x229   : > { %v400_v33 = vsel %vm394_vm2, %v1493_v32, 0.0  ;;  %v405_v35 = vsel %vm1498_vm5, %v1493_v32, 0.0 }
 0x22a   : > { %401 = vadd.xlane.f32.xlu0 %v400_v33 }
 0x22e   : > { %406 = vadd.xlane.f32.xlu0 %v405_v35 }
 0x2b7   : > { %v402_v50 = vpop.xlane.xlu0 %401 }
 0x2b8   : > { %1151 = vrcp.f32 %v402_v50 }
 0x2bb   : > { %v407_v51 = vpop.xlane.xlu0 %406 }
 0x2bc   : > { %1153 = vrcp.f32 %v407_v51 }
 0x2c2   : > { %v1152_v52 = vpop.eup %1151 }
 0x2c3   : > { %v409_v53 = vmul.f32 %v1152_v52, %v402_v50 }
 0x2c5   : > { %v410_v54 = vsub.f32 2.0, %v409_v53 }
 0x2c6   : > { %v1154_v55 = vpop.eup %1153 }
 0x2c7   : > { %v411_v56 = vmul.f32 %v1152_v52, %v410_v54  ;;  %v417_v57 = vmul.f32 %v1154_v55, %v407_v51 }
 0x2c9   : > { %v412_v58 = vmul.f32 %v411_v56, %v402_v50  ;;  %v418_v59 = vsub.f32 2.0, %v417_v57 }
 0x2cb   : > { %v413_v60 = vsub.f32 2.0, %v412_v58  ;;  %v419_v61 = vmul.f32 %v1154_v55, %v418_v59 }
 0x2cd   : > { %v420_v62 = vmul.f32 %v419_v61, %v407_v51  ;;  %v414_v63 = vmul.f32 %v413_v60, %v411_v56 }
 0x2cf   : > { %v421_v1 = vsub.f32 2.0, %v420_v62  ;;  %v415_v3 = vsel %vm394_vm2, %v414_v63, 0.0 }
 0x2d1   : > { %v422_v2 = vmul.f32 %v421_v1, %v419_v61 }
 0x2d3   : > { %v423_v4 = vsel %vm1498_vm5, %v422_v2, 0.0 }
 0x2d4   : > { %v424_v5 = vadd.f32 %v423_v4, %v415_v3 }
 0x2d6   : > { %v425_v6 = vmul.f32 %v1493_v32, %v424_v5 }
 0x2d8   : > { %v445_v7 = vpack.c.bf16 %v425_v6, %v425_v6 }
 0x2da   : > { %1009 = vmatmul.mubr.bf16.vlgmr.msra.gmra.mrb[4].mxu0 %v445_v7 }
 0x2db   : > { %1048 = vmatprep.mubr.msk.bf16.mxu0 %vm1290_vm0, %v1289_v0  ;;  %1033 = vmatpush3.bf16.msra.mxu0 %v1139_v10 }
 0x2dc   : > { %1034 = vmatprep.subr.bf16.mxu0 %v1289_v0 }
 0x2df   : > { %1035 = vmatpush3.bf16.msra.mxu0 %v1140_v11 }
 0x2e0   : > { %1036 = vmatprep.subr.bf16.mxu0 %v1289_v0 }
 0x2e3   : > { %1037 = vmatpush3.bf16.msra.mxu0 %v1141_v12 }
 0x2e4   : > { %1038 = vmatprep.subr.bf16.mxu0 %v1289_v0 }
 0x2e7   : > { %1039 = vmatpush3.bf16.msra.mxu0 %v1142_v13 }
 0x2e8   : > { %1040 = vmatprep.subr.bf16.mxu0 %v1289_v0 }
 0x2eb   : > { %1041 = vmatpush3.bf16.msra.mxu0 %v1143_v14 }
 0x2ec   : > { %1042 = vmatprep.subr.bf16.mxu0 %v1289_v0 }
 0x2ef   : > { %1043 = vmatpush3.bf16.msra.mxu0 %v1144_v15 }
 0x2f0   : > { %1044 = vmatprep.subr.bf16.mxu0 %v1289_v0 }
 0x2f3   : > { %1045 = vmatpush3.bf16.msra.mxu0 %v1145_v24 }
 0x2f4   : > { %1046 = vmatprep.subr.bf16.mxu0 %v1289_v0 }
 0x2f7   : > { %1047 = vmatpush3.bf16.msra.mxu0 %v1146_v25 }
 0x3ad   : > { %v534_v17 = vpop.f32.mrb[4].mxu0 }
 0x3ae   : > { %v535_v18 = vadd.f32 %v892_v16, %v534_v17  ;;  %v1010_v19 = vpop.f32.mrb[5].mxu0 }
 0x3af   : > { %v537_v20 = vpop.f32.mrb[6].mxu0 }
 0x3b0   : > { %v540_v21 = vmax.f32 %v535_v18, 0.0  ;;  %v1011_v22 = vpop.f32.mrb[7].mxu0 }
 0x3b2   : > { %v560_v23 = vpack.c.bf16 %v540_v21, %v540_v21 }
 0x3b4   : > { %1029 = vmatmul.mubr.bf16.vlgmr.msra.gmra.mrb[4].mxu1 %v560_v23 }
 0x487   : > { %v649_v27 = vpop.f32.mrb[4].mxu1 }
 0x488   : > { %v650_v28 = vadd.f32 %v902_v26, %v649_v27  ;;  %v1030_v29 = vpop.f32.mrb[5].mxu1 }
 0x489   : > { %v652_v30 = vpop.f32.mrb[6].mxu1 }
 0x48a   : > { %v655_v31 = vmax.f32 %v650_v28, 0.0  ;;  %v1031_v32 = vpop.f32.mrb[7].mxu1 }
 0x48c   : > { %v675_v33 = vpack.c.bf16 %v655_v31, %v655_v31 }
 0x48e   : > { %1049 = vmatmul.mubr.bf16.vlgmr.msra.gmra.mrb[8].mxu0 %v675_v33 }
 0x561   : > { %v764_v0 = vpop.f32.mrb[8].mxu0 }
 0x562   : > { %v765_v35 = vadd.f32 %v912_v34, %v764_v0  ;;  %v1050_v36 = vpop.f32.mrb[9].mxu0 }
 0x563   : > { %v767_v37 = vpop.f32.mrb[10].mxu0 }
 0x564   : > { %v770_v38 = vadd.f32 %v765_v35, %v425_v6  ;;  %v1051_v39 = vpop.f32.mrb[11].mxu0 }
 0x566   : > { %771 = vst [vmem:[%s200_s28] sm:$0xff] %v770_v38 }
 0x567   : > { %1226 = shalt.err (!%p1223_p7)
}
 0x568   : > { %s1227_s30 = scalar_lea.hbm %s1549_s7, 128  ;;  %s1231_s5 = scalar_lea.hbm %s1596_s3, 256 }
 0x569   : > { %p1228_p9 = scmp.ne.s32.totalorder %s1549_s7, %s1227_s30  ;;  %p1232_p0 = scmp.lt.u32.totalorder %s1549_s7, %s1596_s3 }
 0x56a   : > { %p1233_p11 = scmp.lt.u32.totalorder %s1231_s5, %s1227_s30  ;;  %p1235_p4 = scmp.lt.u32.totalorder %s1227_s30, %s1549_s7 }
 0x56b   : > { %p1229_p2 = pnand %p1228_p9, %p1403_p12 }
 0x56c   : > { %p1234_p1 = por %p1233_p11, %p1232_p0 }
 0x56d   : > { %p1230_p5 = pneg %p1229_p2 }
 0x56e   : > { %p1236_p6 = por %p1235_p4, %p1234_p1 }
 0x570   : > { %p1237_p8 = pnand %p1236_p6, %p1230_p5 }
 0x572   : > { %1240 = shalt.err (!%p1237_p8)
}
 0x573   : > { %1058 = dma.vmem_to_hbm [thread:$0]  (%p1403_p12), %s1551_s29, 128, %s1549_s7, %s773_s16  }
 0x574 PF: > { %s798_s10 = sand.u32 1, %s1271_s12   ;;  %p1613_p10 = scmp.ne.s32.totalorder %s1601_s19, 0 }
 0x575   : > { %p1614_p13 = scmp.ge.s32.totalorder %s1283_s15, 2  ;;  %s799_s11 = scalar_lea.sflag [#allocation4], %s798_s10 }
 0x577   : > { %p1069_p3 = pnand %p1614_p13, %p1613_p10 }
 0x579   : > { %1266 = dma.done.wait (!%p1069_p3), %s799_s11, 128  }
 0x57a   : > { %1268 = vsyncadd (!%p1069_p3), %s799_s11, 4294967168  ;;  %p17_p7 = scmp.ge.s32.totalorder %s1368_s24, 4   ;;  %s1615_s12 = smov %s1275_s13 }
 0x57b   : > { %s1616_s13 = smov %s1279_s14  ;;  %s1617_s14 = smov %s1399_s17 }
 0x57c   : > { %s1618_s15 = smov %s1368_s24  ;;  %19 = sbr.rel (!%p17_p7) target bundleno = 6 (0x6), region = 89 }
 0x583   :  { %804 = vsyncpa [#allocation3], 1 }
 0x584   :  { %806 = vsyncpa [#allocation3 + $0x1], 1 }
 0x585   :  { %807 = vsyncpa [#allocation6], 1 }
 0x586   :  { %808 = vsyncpa [#allocation4], 1 }
 0x587   :  { %810 = vsyncpa [#allocation4 + $0x1], 1 }

</bundles_post_ra>
